<compile_context>
chip_gen: v7x
topology: tpu7x:2x2x1
jax: 0.10.0
libtpu: 0.0.40
codegen_flags: <defaults>
</compile_context>

<pallas_src>
import jax
import jax.numpy as jnp
from jax.experimental import pallas as pl
from jax.experimental.pallas import tpu as pltpu  # noqa: F401  (TPU backend)

# ----------------------------- model config ---------------------------------
B = 2            # batch
S = 8            # sequence length
H = 32           # hidden size (backbone.config.hidden_size)
NUM_HEADS = 4
HEAD_DIM = H // NUM_HEADS
FF = 64          # FFN intermediate size
VOCAB = 50
VOCAB_PAD = 64   # embedding table padded to a sublane-friendly row count
NUM_LABELS = 4   # args.num_labels
LN_EPS = 1e-5
LANES = 128      # output slab / packed-weight lane width

# bias / LayerNorm slab row indices (packed into one (BIAS_ROWS, BIAS_LANES) f32 array)
_BQ, _BK, _BV, _BO, _B2, _BP, _LN1G, _LN1B, _LN2G, _LN2B, _B1, _BC = range(12)
BIAS_ROWS = 12
BIAS_LANES = max(H, FF, NUM_LABELS)   # 64


def _layer_norm(x, gamma, beta):
    mu = jnp.mean(x, axis=-1, keepdims=True)
    var = jnp.mean((x - mu) * (x - mu), axis=-1, keepdims=True)
    return (x - mu) * jax.lax.rsqrt(var + LN_EPS) * gamma + beta


def _gelu_tanh(x):
    # tanh-approximate GELU (BERT-style); tanh goes to the EUP.
    # TODO(synk): switch to exact erf-GELU if the real backbone config uses it.
    c = 0.7978845608028654  # sqrt(2/pi)
    return 0.5 * x * (1.0 + jnp.tanh(c * (x + 0.044715 * x * x * x)))


# ------------------------- fused forward kernel -----------------------------
def fused_kernel(ids_ref, mask_ref, wemb_ref, pos_ref, wqkvo_ref, wfpc_ref,
                 w2_ref, bias_ref, slab_ref, attn_ref):
    bias = bias_ref[...]                    # (BIAS_ROWS, BIAS_LANES) f32

    def brow(r, n):                         # (1, n) f32 slice of the bias slab
        return bias[r:r + 1, 0:n]

    # --- fused embedding gather: exact f32 one-hot MXU dot + positional add ---
    ids = ids_ref[...]                                               # (B*S, 1) int32
    onehot = (jax.lax.broadcasted_iota(jnp.int32, (B * S, VOCAB_PAD), 1)
              == ids).astype(jnp.float32)                            # (B*S, VOCAB_PAD)
    x = jnp.dot(onehot, wemb_ref[...],
                preferred_element_type=jnp.float32) + pos_ref[...]   # (B*S, H) f32
    xb = x.astype(jnp.bfloat16)

    wqkvo = wqkvo_ref[...]                  # (H, 4H)=(32,128) bf16 : wq | wk | wv | wo
    wfpc = wfpc_ref[...]                    # (H, 128) bf16 : w1(64) | wp(32) | wc(4)+pad
    w2 = w2_ref[...]                        # (FF, H) bf16

    # --- QKV projection: one bf16 MXU push over the packed (32,128) weight slab ---
    qkv = jnp.dot(xb, wqkvo, preferred_element_type=jnp.float32)     # (B*S, 4H)
    q = qkv[:, 0 * H:1 * H] + brow(_BQ, H)
    k = qkv[:, 1 * H:2 * H] + brow(_BK, H)
    v = qkv[:, 2 * H:3 * H] + brow(_BV, H)

    # --- head-batched masked attention ---
    def to_heads(t):
        # (B*S, H) -> (NH*B, S, HD), head-major leading order; static lane slices +
        # trivial leading-dim reshape + one leading-axis concat (no 4-D transpose).
        return jnp.concatenate(
            [t[:, h * HEAD_DIM:(h + 1) * HEAD_DIM].reshape(B, S, HEAD_DIM)
             for h in range(NUM_HEADS)], axis=0)

    qh = to_heads(q).astype(jnp.bfloat16)                            # (NH*B, S, HD)
    kh = to_heads(k).astype(jnp.bfloat16)
    vh = to_heads(v).astype(jnp.bfloat16)

    m = mask_ref[...]                                                # (B, S) f32
    neg = ((1.0 - m) * (-1e9))[:, None, :]                           # (B, 1, S)
    mb = jnp.concatenate([neg] * NUM_HEADS, axis=0)                  # (NH*B, 1, S)

    scale = 1.0 / (HEAD_DIM ** 0.5)
    s = jnp.einsum('bqd,bkd->bqk', qh, kh,
                   preferred_element_type=jnp.float32) * scale + mb  # (NH*B, S, S)
    # single exact f32 softmax pass over all heads & batches (probs are user-visible)
    e = jnp.exp(s - jnp.max(s, axis=-1, keepdims=True))
    p = e / jnp.sum(e, axis=-1, keepdims=True)
    attn_ref[...] = p                                                # output_attentions=True

    ctx = jnp.einsum('bqk,bkd->bqd', p.astype(jnp.bfloat16), vh,
                     preferred_element_type=jnp.float32)             # (NH*B, S, HD)
    ctx_flat = jnp.concatenate(
        [ctx[h * B:(h + 1) * B].reshape(B * S, HEAD_DIM)
         for h in range(NUM_HEADS)], axis=-1)                        # (B*S, H)

    # one K=H output projection dot (instead of four K=HEAD_DIM dots)
    attn_out = jnp.dot(ctx_flat.astype(jnp.bfloat16), wqkvo[:, 3 * H:4 * H],
                       preferred_element_type=jnp.float32) + brow(_BO, H)

    h1 = _layer_norm(x + attn_out, brow(_LN1G, H), brow(_LN1B, H))

    # --- GELU FFN ---
    ff = jnp.dot(h1.astype(jnp.bfloat16), wfpc[:, 0:FF],
                 preferred_element_type=jnp.float32) + brow(_B1, FF)
    ff = _gelu_tanh(ff)
    ff = jnp.dot(ff.astype(jnp.bfloat16), w2,
                 preferred_element_type=jnp.float32) + brow(_B2, H)
    h2 = _layer_norm(h1 + ff, brow(_LN2G, H), brow(_LN2B, H))

    h2b = h2.astype(jnp.bfloat16)
    # BERT pooler: computed for all rows (MXU works on >=8 sublanes anyway); wrapper
    # extracts the CLS rows. Classifier: Dropout(0.1) is identity at inference.
    # TODO(synk): training-mode Dropout(0.1) (random mask) not implemented; eval semantics.
    pool_all = jnp.tanh(jnp.dot(h2b, wfpc[:, FF:FF + H],
                                preferred_element_type=jnp.float32) + brow(_BP, H))
    logits_pad = jnp.dot(h2b, wfpc[:, FF + H:FF + 2 * H],
                         preferred_element_type=jnp.float32) + brow(_BC, H)   # (B*S, 32)

    # single lane-dense 128-lane output slab: hid | pooler | logits(+pad) | zeros
    slab_ref[...] = jnp.concatenate(
        [h2, pool_all, logits_pad, jnp.zeros((B * S, H), jnp.float32)], axis=-1)


def fused_forward(ids, mask_f, wemb, pos, w_qkvo, w_fpc, w2, bias):
    """Single grid-less launch; all operands are whole-array VMEM blocks."""
    return pl.pallas_call(
        fused_kernel,
        out_shape=(
            jax.ShapeDtypeStruct((B * S, LANES), jnp.float32),            # packed slab
            jax.ShapeDtypeStruct((NUM_HEADS * B, S, S), jnp.float32),     # attention probs
        ),
    )(ids, mask_f, wemb, pos, w_qkvo, w_fpc, w2, bias)


# ------------------------------- parameters ---------------------------------
def init_params(key):
    ks = jax.random.split(key, 10)
    n = lambda k, shape, sc=0.02: (sc * jax.random.normal(k, shape)).astype(jnp.float32)
    return {
        "word_emb": n(ks[0], (VOCAB, H)),
        "pos_emb": n(ks[1], (S, H)),
        "wq": n(ks[2], (H, H)), "bq": jnp.zeros((H,), jnp.float32),
        "wk": n(ks[3], (H, H)), "bk": jnp.zeros((H,), jnp.float32),
        "wv": n(ks[4], (H, H)), "bv": jnp.zeros((H,), jnp.float32),
        "wo": n(ks[5], (H, H)), "bo": jnp.zeros((H,), jnp.float32),
        "ln1_g": jnp.ones((H,), jnp.float32), "ln1_b": jnp.zeros((H,), jnp.float32),
        "w1": n(ks[6], (H, FF)), "b1": jnp.zeros((FF,), jnp.float32),
        "w2": n(ks[7], (FF, H)), "b2": jnp.zeros((H,), jnp.float32),
        "ln2_g": jnp.ones((H,), jnp.float32), "ln2_b": jnp.zeros((H,), jnp.float32),
        "wp": n(ks[8], (H, H)), "bp": jnp.zeros((H,), jnp.float32),   # pooler
        "wc": n(ks[9], (H, NUM_LABELS)), "bc": jnp.zeros((NUM_LABELS,), jnp.float32),
    }


def pack_params(p):
    """Pack 20 tiny tensors into 6 kernel inputs (fewer DMA descriptors).
    Matmul weights pre-cast to bf16 (MXU-native); biases / LN / embeddings stay f32.
    NOTE: weights here are (in, out); importing PyTorch nn.Linear weights requires a
    transpose ((out, in) -> (in, out)) before packing."""
    bf = lambda a: a.astype(jnp.bfloat16)
    w_qkvo = bf(jnp.concatenate([p["wq"], p["wk"], p["wv"], p["wo"]], axis=1))   # (H, 4H)
    w_fpc = bf(jnp.concatenate(                                                   # (H, 128)
        [p["w1"], p["wp"], p["wc"],
         jnp.zeros((H, LANES - (FF + H + NUM_LABELS)), jnp.float32)], axis=1))
    w2 = bf(p["w2"])                                                              # (FF, H)
    wemb = jnp.pad(p["word_emb"], ((0, VOCAB_PAD - VOCAB), (0, 0)))               # (64, H)
    pos = jnp.tile(p["pos_emb"], (B, 1)).astype(jnp.float32)                      # (B*S, H)

    def row(v):
        v = v.reshape(1, -1).astype(jnp.float32)
        return jnp.pad(v, ((0, 0), (0, BIAS_LANES - v.shape[1])))

    bias = jnp.concatenate([                       # order must match _B* row indices
        row(p["bq"]), row(p["bk"]), row(p["bv"]), row(p["bo"]),
        row(p["b2"]), row(p["bp"]),
        row(p["ln1_g"]), row(p["ln1_b"]), row(p["ln2_g"]), row(p["ln2_b"]),
        row(p["b1"]), row(p["bc"]),
    ], axis=0)                                     # (BIAS_ROWS, BIAS_LANES) f32
    return {"wemb": wemb, "pos": pos, "w_qkvo": w_qkvo, "w_fpc": w_fpc,
            "w2": w2, "bias": bias}


# ------------------------------ forward pass ---------------------------------
@jax.jit
def forward(token_ids, mask, packed):
    """Mirrors MyModel.forward: returns (backbone_out, classifier(last_hidden_state))."""
    ids = token_ids.reshape(B * S, 1).astype(jnp.int32)
    mask_f = mask.astype(jnp.float32)                      # (B, S)

    slab, attn8 = fused_forward(ids, mask_f, packed["wemb"], packed["pos"],
                                packed["w_qkvo"], packed["w_fpc"],
                                packed["w2"], packed["bias"])

    hid = slab[:, 0:H].reshape(B, S, H)
    pool = slab[:, H:2 * H].reshape(B, S, H)[:, 0, :]                 # CLS rows
    logits = slab[:, 2 * H:2 * H + NUM_LABELS].reshape(B, S, NUM_LABELS)
    attn = attn8.reshape(NUM_HEADS, B, S, S).transpose(1, 0, 2, 3)    # (B, NH, S, S)

    backbone_out = {
        "last_hidden_state": hid,
        "pooler_output": pool,
        "attentions": (attn,),
    }
    return backbone_out, logits


if __name__ == "__main__":
    key = jax.random.PRNGKey(0)
    pkey, xkey = jax.random.split(key)
    params = init_params(pkey)
    packed = pack_params(params)

    token_ids = jax.random.randint(xkey, (B, S), 0, VOCAB, dtype=jnp.int32)
    mask = jnp.ones((B, S), jnp.int32).at[1, -2:].set(0)   # pad out last 2 tokens of sample 1

    out, logits = forward(token_ids, mask, packed)
    jax.block_until_ready((out, logits))

    assert out["last_hidden_state"].shape == (B, S, H)
    assert out["pooler_output"].shape == (B, H)
    assert out["attentions"][0].shape == (B, NUM_HEADS, S, S)
    assert logits.shape == (B, S, NUM_LABELS)
    # attention over masked keys must be ~0
    assert float(jnp.max(out["attentions"][0][1, :, :, -2:])) < 1e-6
    # exact softmax: rows sum to 1
    assert float(jnp.max(jnp.abs(jnp.sum(out["attentions"][0], axis=-1) - 1.0))) < 1e-5

    print("KERNEL_OK")
</pallas_src>

<mosaic_0001>
module attributes {stable_mosaic.version = 11 : i64} {
  func.func @fused_kernel(%arg0: memref<16x1xi32, #tpu.memory_space<vmem>>, %arg1: memref<2x8xf32, #tpu.memory_space<vmem>>, %arg2: memref<64x32xf32, #tpu.memory_space<vmem>>, %arg3: memref<16x32xf32, #tpu.memory_space<vmem>>, %arg4: memref<32x128xbf16, #tpu.memory_space<vmem>>, %arg5: memref<32x128xbf16, #tpu.memory_space<vmem>>, %arg6: memref<64x32xbf16, #tpu.memory_space<vmem>>, %arg7: memref<12x64xf32, #tpu.memory_space<vmem>>, %arg8: memref<16x128xf32, #tpu.memory_space<vmem>>, %arg9: memref<8x8x8xf32, #tpu.memory_space<vmem>>) attributes {dimension_semantics = [], scalar_prefetch = 0 : i64, scratch_operands = 0 : i64, tpu.core_type = #tpu.core_type<tc>} {
    %c0 = arith.constant 0 : index
    %c0_0 = arith.constant 0 : index
    %0 = vector.load %arg7[%c0, %c0_0] : memref<12x64xf32, #tpu.memory_space<vmem>>, vector<12x64xf32>
    %c0_1 = arith.constant 0 : index
    %c0_2 = arith.constant 0 : index
    %1 = vector.load %arg0[%c0_1, %c0_2] : memref<16x1xi32, #tpu.memory_space<vmem>>, vector<16x1xi32>
    %2 = tpu.iota {dimensions = array<i32: 1>} : vector<16x64xi32>
    %3 = vector.broadcast %1 : vector<16x1xi32> to vector<16x64xi32>
    %4 = arith.cmpi eq, %2, %3 : vector<16x64xi32>
    %5 = arith.extui %4 : vector<16x64xi1> to vector<16x64xi32>
    %6 = arith.sitofp %5 : vector<16x64xi32> to vector<16x64xf32>
    %c0_3 = arith.constant 0 : index
    %c0_4 = arith.constant 0 : index
    %7 = vector.load %arg2[%c0_3, %c0_4] : memref<64x32xf32, #tpu.memory_space<vmem>>, vector<64x32xf32>
    %cst = arith.constant dense<0.000000e+00> : vector<16x32xf32>
    %8 = tpu.matmul %6, %7, %cst {dimension_numbers = #tpu.dot_dimension_numbers<[1], [0], [0], [1], [0, 0, 1, 1], [], []>} : vector<16x64xf32>, vector<64x32xf32>, vector<16x32xf32> -> vector<16x32xf32>
    %c0_5 = arith.constant 0 : index
    %c0_6 = arith.constant 0 : index
    %9 = vector.load %arg3[%c0_5, %c0_6] : memref<16x32xf32, #tpu.memory_space<vmem>>, vector<16x32xf32>
    %10 = arith.addf %8, %9 : vector<16x32xf32>
    %11 = arith.truncf %10 : vector<16x32xf32> to vector<16x32xbf16>
    %c0_7 = arith.constant 0 : index
    %c0_8 = arith.constant 0 : index
    %12 = vector.load %arg4[%c0_7, %c0_8] : memref<32x128xbf16, #tpu.memory_space<vmem>>, vector<32x128xbf16>
    %c0_9 = arith.constant 0 : index
    %c0_10 = arith.constant 0 : index
    %13 = vector.load %arg5[%c0_9, %c0_10] : memref<32x128xbf16, #tpu.memory_space<vmem>>, vector<32x128xbf16>
    %c0_11 = arith.constant 0 : index
    %c0_12 = arith.constant 0 : index
    %14 = vector.load %arg6[%c0_11, %c0_12] : memref<64x32xbf16, #tpu.memory_space<vmem>>, vector<64x32xbf16>
    %cst_13 = arith.constant dense<0.000000e+00> : vector<16x128xf32>
    %15 = tpu.matmul %11, %12, %cst_13 {dimension_numbers = #tpu.dot_dimension_numbers<[1], [0], [0], [1], [0, 0, 1, 1], [], []>} : vector<16x32xbf16>, vector<32x128xbf16>, vector<16x128xf32> -> vector<16x128xf32>
    %16 = vector.extract_strided_slice %15 {offsets = [0, 0], sizes = [16, 32], strides = [1, 1]} : vector<16x128xf32> to vector<16x32xf32>
    %17 = vector.extract_strided_slice %0 {offsets = [0, 0], sizes = [1, 32], strides = [1, 1]} : vector<12x64xf32> to vector<1x32xf32>
    %18 = vector.broadcast %17 : vector<1x32xf32> to vector<16x32xf32>
    %19 = arith.addf %16, %18 : vector<16x32xf32>
    %20 = vector.extract_strided_slice %15 {offsets = [0, 32], sizes = [16, 32], strides = [1, 1]} : vector<16x128xf32> to vector<16x32xf32>
    %21 = vector.extract_strided_slice %0 {offsets = [1, 0], sizes = [1, 32], strides = [1, 1]} : vector<12x64xf32> to vector<1x32xf32>
    %22 = vector.broadcast %21 : vector<1x32xf32> to vector<16x32xf32>
    %23 = arith.addf %20, %22 : vector<16x32xf32>
    %24 = vector.extract_strided_slice %15 {offsets = [0, 64], sizes = [16, 32], strides = [1, 1]} : vector<16x128xf32> to vector<16x32xf32>
    %25 = vector.extract_strided_slice %0 {offsets = [2, 0], sizes = [1, 32], strides = [1, 1]} : vector<12x64xf32> to vector<1x32xf32>
    %26 = vector.broadcast %25 : vector<1x32xf32> to vector<16x32xf32>
    %27 = arith.addf %24, %26 : vector<16x32xf32>
    %28 = vector.extract_strided_slice %19 {offsets = [0, 0], sizes = [16, 8], strides = [1, 1]} : vector<16x32xf32> to vector<16x8xf32>
    %29 = vector.shape_cast %28 : vector<16x8xf32> to vector<2x8x8xf32>
    %30 = vector.extract_strided_slice %19 {offsets = [0, 8], sizes = [16, 8], strides = [1, 1]} : vector<16x32xf32> to vector<16x8xf32>
    %31 = vector.shape_cast %30 : vector<16x8xf32> to vector<2x8x8xf32>
    %32 = vector.extract_strided_slice %19 {offsets = [0, 16], sizes = [16, 8], strides = [1, 1]} : vector<16x32xf32> to vector<16x8xf32>
    %33 = vector.shape_cast %32 : vector<16x8xf32> to vector<2x8x8xf32>
    %34 = vector.extract_strided_slice %19 {offsets = [0, 24], sizes = [16, 8], strides = [1, 1]} : vector<16x32xf32> to vector<16x8xf32>
    %35 = vector.shape_cast %34 : vector<16x8xf32> to vector<2x8x8xf32>
    %36 = tpu.concatenate %29, %31, %33, %35 in 0 : vector<2x8x8xf32>, vector<2x8x8xf32>, vector<2x8x8xf32>, vector<2x8x8xf32> -> vector<8x8x8xf32>
    %37 = arith.truncf %36 : vector<8x8x8xf32> to vector<8x8x8xbf16>
    %38 = vector.extract_strided_slice %23 {offsets = [0, 0], sizes = [16, 8], strides = [1, 1]} : vector<16x32xf32> to vector<16x8xf32>
    %39 = vector.shape_cast %38 : vector<16x8xf32> to vector<2x8x8xf32>
    %40 = vector.extract_strided_slice %23 {offsets = [0, 8], sizes = [16, 8], strides = [1, 1]} : vector<16x32xf32> to vector<16x8xf32>
    %41 = vector.shape_cast %40 : vector<16x8xf32> to vector<2x8x8xf32>
    %42 = vector.extract_strided_slice %23 {offsets = [0, 16], sizes = [16, 8], strides = [1, 1]} : vector<16x32xf32> to vector<16x8xf32>
    %43 = vector.shape_cast %42 : vector<16x8xf32> to vector<2x8x8xf32>
    %44 = vector.extract_strided_slice %23 {offsets = [0, 24], sizes = [16, 8], strides = [1, 1]} : vector<16x32xf32> to vector<16x8xf32>
    %45 = vector.shape_cast %44 : vector<16x8xf32> to vector<2x8x8xf32>
    %46 = tpu.concatenate %39, %41, %43, %45 in 0 : vector<2x8x8xf32>, vector<2x8x8xf32>, vector<2x8x8xf32>, vector<2x8x8xf32> -> vector<8x8x8xf32>
    %47 = arith.truncf %46 : vector<8x8x8xf32> to vector<8x8x8xbf16>
    %48 = vector.extract_strided_slice %27 {offsets = [0, 0], sizes = [16, 8], strides = [1, 1]} : vector<16x32xf32> to vector<16x8xf32>
    %49 = vector.shape_cast %48 : vector<16x8xf32> to vector<2x8x8xf32>
    %50 = vector.extract_strided_slice %27 {offsets = [0, 8], sizes = [16, 8], strides = [1, 1]} : vector<16x32xf32> to vector<16x8xf32>
    %51 = vector.shape_cast %50 : vector<16x8xf32> to vector<2x8x8xf32>
    %52 = vector.extract_strided_slice %27 {offsets = [0, 16], sizes = [16, 8], strides = [1, 1]} : vector<16x32xf32> to vector<16x8xf32>
    %53 = vector.shape_cast %52 : vector<16x8xf32> to vector<2x8x8xf32>
    %54 = vector.extract_strided_slice %27 {offsets = [0, 24], sizes = [16, 8], strides = [1, 1]} : vector<16x32xf32> to vector<16x8xf32>
    %55 = vector.shape_cast %54 : vector<16x8xf32> to vector<2x8x8xf32>
    %56 = tpu.concatenate %49, %51, %53, %55 in 0 : vector<2x8x8xf32>, vector<2x8x8xf32>, vector<2x8x8xf32>, vector<2x8x8xf32> -> vector<8x8x8xf32>
    %57 = arith.truncf %56 : vector<8x8x8xf32> to vector<8x8x8xbf16>
    %c0_14 = arith.constant 0 : index
    %c0_15 = arith.constant 0 : index
    %58 = vector.load %arg1[%c0_14, %c0_15] : memref<2x8xf32, #tpu.memory_space<vmem>>, vector<2x8xf32>
    %cst_16 = arith.constant 1.000000e+00 : f32
    %59 = vector.broadcast %cst_16 : f32 to vector<2x8xf32>
    %60 = arith.subf %59, %58 : vector<2x8xf32>
    %cst_17 = arith.constant -1.000000e+09 : f32
    %61 = vector.broadcast %cst_17 : f32 to vector<2x8xf32>
    %62 = arith.mulf %60, %61 : vector<2x8xf32>
    %63 = vector.shape_cast %62 : vector<2x8xf32> to vector<2x1x8xf32>
    %64 = tpu.concatenate %63, %63, %63, %63 in 0 : vector<2x1x8xf32>, vector<2x1x8xf32>, vector<2x1x8xf32>, vector<2x1x8xf32> -> vector<8x1x8xf32>
    "tpu.trace_start"() <{level = 10 : i32, message = "bqd,bkd->bqk"}> : () -> ()
    %cst_18 = arith.constant dense<0.000000e+00> : vector<8x8x8xf32>
    %65 = tpu.matmul %37, %47, %cst_18 {dimension_numbers = #tpu.dot_dimension_numbers<[2], [2], [1], [1], [0, 0, 0, 1, 1, 1], [0], [0]>} : vector<8x8x8xbf16>, vector<8x8x8xbf16>, vector<8x8x8xf32> -> vector<8x8x8xf32>
    "tpu.trace_stop"() : () -> ()
    %cst_19 = arith.constant 0.353553385 : f32
    %66 = vector.broadcast %cst_19 : f32 to vector<8x8x8xf32>
    %67 = arith.mulf %65, %66 : vector<8x8x8xf32>
    %68 = vector.broadcast %64 : vector<8x1x8xf32> to vector<8x8x8xf32>
    %69 = arith.addf %67, %68 : vector<8x8x8xf32>
    %cst_20 = arith.constant dense<0xFF800000> : vector<8x8xf32>
    %70 = vector.multi_reduction <maximumf>, %69, %cst_20 [2] : vector<8x8x8xf32> to vector<8x8xf32>
    %71 = vector.shape_cast %70 : vector<8x8xf32> to vector<8x8x1xf32>
    %72 = vector.broadcast %71 : vector<8x8x1xf32> to vector<8x8x8xf32>
    %73 = arith.subf %69, %72 : vector<8x8x8xf32>
    %74 = math.exp %73 : vector<8x8x8xf32>
    %cst_21 = arith.constant dense<0.000000e+00> : vector<8x8xf32>
    %75 = vector.multi_reduction <add>, %74, %cst_21 [2] : vector<8x8x8xf32> to vector<8x8xf32>
    %76 = vector.shape_cast %75 : vector<8x8xf32> to vector<8x8x1xf32>
    %77 = vector.broadcast %76 : vector<8x8x1xf32> to vector<8x8x8xf32>
    %78 = arith.divf %74, %77 : vector<8x8x8xf32>
    %c0_22 = arith.constant 0 : index
    %c0_23 = arith.constant 0 : index
    %c0_24 = arith.constant 0 : index
    %79 = vector.load %arg9[%c0_22, %c0_23, %c0_24] : memref<8x8x8xf32, #tpu.memory_space<vmem>>, vector<8x8x8xf32>
    tpu.vector_store %arg9[%c0_22, %c0_23, %c0_24], %78 {strides = array<i32>} : memref<8x8x8xf32, #tpu.memory_space<vmem>>, vector<8x8x8xf32>,
    %80 = arith.truncf %78 : vector<8x8x8xf32> to vector<8x8x8xbf16>
    "tpu.trace_start"() <{level = 10 : i32, message = "bqk,bkd->bqd"}> : () -> ()
    %cst_25 = arith.constant dense<0.000000e+00> : vector<8x8x8xf32>
    %81 = tpu.matmul %80, %57, %cst_25 {dimension_numbers = #tpu.dot_dimension_numbers<[2], [1], [1], [2], [0, 0, 0, 1, 1, 2], [0], [0]>} : vector<8x8x8xbf16>, vector<8x8x8xbf16>, vector<8x8x8xf32> -> vector<8x8x8xf32>
    "tpu.trace_stop"() : () -> ()
    %82 = vector.extract_strided_slice %81 {offsets = [0, 0, 0], sizes = [2, 8, 8], strides = [1, 1, 1]} : vector<8x8x8xf32> to vector<2x8x8xf32>
    %83 = vector.shape_cast %82 : vector<2x8x8xf32> to vector<16x8xf32>
    %84 = vector.extract_strided_slice %81 {offsets = [2, 0, 0], sizes = [2, 8, 8], strides = [1, 1, 1]} : vector<8x8x8xf32> to vector<2x8x8xf32>
    %85 = vector.shape_cast %84 : vector<2x8x8xf32> to vector<16x8xf32>
    %86 = vector.extract_strided_slice %81 {offsets = [4, 0, 0], sizes = [2, 8, 8], strides = [1, 1, 1]} : vector<8x8x8xf32> to vector<2x8x8xf32>
    %87 = vector.shape_cast %86 : vector<2x8x8xf32> to vector<16x8xf32>
    %88 = vector.extract_strided_slice %81 {offsets = [6, 0, 0], sizes = [2, 8, 8], strides = [1, 1, 1]} : vector<8x8x8xf32> to vector<2x8x8xf32>
    %89 = vector.shape_cast %88 : vector<2x8x8xf32> to vector<16x8xf32>
    %90 = tpu.concatenate %83, %85, %87, %89 in 1 : vector<16x8xf32>, vector<16x8xf32>, vector<16x8xf32>, vector<16x8xf32> -> vector<16x32xf32>
    %91 = arith.truncf %90 : vector<16x32xf32> to vector<16x32xbf16>
    %92 = vector.extract_strided_slice %12 {offsets = [0, 96], sizes = [32, 32], strides = [1, 1]} : vector<32x128xbf16> to vector<32x32xbf16>
    %cst_26 = arith.constant dense<0.000000e+00> : vector<16x32xf32>
    %93 = tpu.matmul %91, %92, %cst_26 {dimension_numbers = #tpu.dot_dimension_numbers<[1], [0], [0], [1], [0, 0, 1, 1], [], []>} : vector<16x32xbf16>, vector<32x32xbf16>, vector<16x32xf32> -> vector<16x32xf32>
    %94 = vector.extract_strided_slice %0 {offsets = [3, 0], sizes = [1, 32], strides = [1, 1]} : vector<12x64xf32> to vector<1x32xf32>
    %95 = vector.broadcast %94 : vector<1x32xf32> to vector<16x32xf32>
    %96 = arith.addf %93, %95 : vector<16x32xf32>
    %97 = arith.addf %10, %96 : vector<16x32xf32>
    %98 = vector.extract_strided_slice %0 {offsets = [6, 0], sizes = [1, 32], strides = [1, 1]} : vector<12x64xf32> to vector<1x32xf32>
    %99 = vector.extract_strided_slice %0 {offsets = [7, 0], sizes = [1, 32], strides = [1, 1]} : vector<12x64xf32> to vector<1x32xf32>
    %cst_27 = arith.constant dense<0.000000e+00> : vector<16xf32>
    %100 = vector.multi_reduction <add>, %97, %cst_27 [1] : vector<16x32xf32> to vector<16xf32>
    %101 = vector.shape_cast %100 : vector<16xf32> to vector<16x1xf32>
    %cst_28 = arith.constant 3.200000e+01 : f32
    %102 = vector.broadcast %cst_28 : f32 to vector<16x1xf32>
    %103 = arith.divf %101, %102 : vector<16x1xf32>
    %104 = vector.broadcast %103 : vector<16x1xf32> to vector<16x32xf32>
    %105 = arith.subf %97, %104 : vector<16x32xf32>
    %106 = vector.broadcast %103 : vector<16x1xf32> to vector<16x32xf32>
    %107 = arith.subf %97, %106 : vector<16x32xf32>
    %108 = arith.mulf %105, %107 : vector<16x32xf32>
    %cst_29 = arith.constant dense<0.000000e+00> : vector<16xf32>
    %109 = vector.multi_reduction <add>, %108, %cst_29 [1] : vector<16x32xf32> to vector<16xf32>
    %110 = vector.shape_cast %109 : vector<16xf32> to vector<16x1xf32>
    %cst_30 = arith.constant 3.200000e+01 : f32
    %111 = vector.broadcast %cst_30 : f32 to vector<16x1xf32>
    %112 = arith.divf %110, %111 : vector<16x1xf32>
    %113 = vector.broadcast %103 : vector<16x1xf32> to vector<16x32xf32>
    %114 = arith.subf %97, %113 : vector<16x32xf32>
    %cst_31 = arith.constant 9.99999974E-6 : f32
    %115 = vector.broadcast %cst_31 : f32 to vector<16x1xf32>
    %116 = arith.addf %112, %115 : vector<16x1xf32>
    %117 = math.rsqrt %116 : vector<16x1xf32>
    %118 = vector.broadcast %117 : vector<16x1xf32> to vector<16x32xf32>
    %119 = arith.mulf %114, %118 : vector<16x32xf32>
    %120 = vector.broadcast %98 : vector<1x32xf32> to vector<16x32xf32>
    %121 = arith.mulf %119, %120 : vector<16x32xf32>
    %122 = vector.broadcast %99 : vector<1x32xf32> to vector<16x32xf32>
    %123 = arith.addf %121, %122 : vector<16x32xf32>
    %124 = arith.truncf %123 : vector<16x32xf32> to vector<16x32xbf16>
    %125 = vector.extract_strided_slice %13 {offsets = [0, 0], sizes = [32, 64], strides = [1, 1]} : vector<32x128xbf16> to vector<32x64xbf16>
    %cst_32 = arith.constant dense<0.000000e+00> : vector<16x64xf32>
    %126 = tpu.matmul %124, %125, %cst_32 {dimension_numbers = #tpu.dot_dimension_numbers<[1], [0], [0], [1], [0, 0, 1, 1], [], []>} : vector<16x32xbf16>, vector<32x64xbf16>, vector<16x64xf32> -> vector<16x64xf32>
    %127 = vector.extract_strided_slice %0 {offsets = [10, 0], sizes = [1, 64], strides = [1, 1]} : vector<12x64xf32> to vector<1x64xf32>
    %128 = vector.broadcast %127 : vector<1x64xf32> to vector<16x64xf32>
    %129 = arith.addf %126, %128 : vector<16x64xf32>
    %cst_33 = arith.constant 5.000000e-01 : f32
    %130 = vector.broadcast %cst_33 : f32 to vector<16x64xf32>
    %131 = arith.mulf %130, %129 : vector<16x64xf32>
    %cst_34 = arith.constant 4.471500e-02 : f32
    %132 = vector.broadcast %cst_34 : f32 to vector<16x64xf32>
    %133 = arith.mulf %132, %129 : vector<16x64xf32>
    %134 = arith.mulf %133, %129 : vector<16x64xf32>
    %135 = arith.mulf %134, %129 : vector<16x64xf32>
    %136 = arith.addf %129, %135 : vector<16x64xf32>
    %cst_35 = arith.constant 0.797884583 : f32
    %137 = vector.broadcast %cst_35 : f32 to vector<16x64xf32>
    %138 = arith.mulf %137, %136 : vector<16x64xf32>
    %139 = math.tanh %138 : vector<16x64xf32>
    %cst_36 = arith.constant 1.000000e+00 : f32
    %140 = vector.broadcast %cst_36 : f32 to vector<16x64xf32>
    %141 = arith.addf %140, %139 : vector<16x64xf32>
    %142 = arith.mulf %131, %141 : vector<16x64xf32>
    %143 = arith.truncf %142 : vector<16x64xf32> to vector<16x64xbf16>
    %cst_37 = arith.constant dense<0.000000e+00> : vector<16x32xf32>
    %144 = tpu.matmul %143, %14, %cst_37 {dimension_numbers = #tpu.dot_dimension_numbers<[1], [0], [0], [1], [0, 0, 1, 1], [], []>} : vector<16x64xbf16>, vector<64x32xbf16>, vector<16x32xf32> -> vector<16x32xf32>
    %145 = vector.extract_strided_slice %0 {offsets = [4, 0], sizes = [1, 32], strides = [1, 1]} : vector<12x64xf32> to vector<1x32xf32>
    %146 = vector.broadcast %145 : vector<1x32xf32> to vector<16x32xf32>
    %147 = arith.addf %144, %146 : vector<16x32xf32>
    %148 = arith.addf %123, %147 : vector<16x32xf32>
    %149 = vector.extract_strided_slice %0 {offsets = [8, 0], sizes = [1, 32], strides = [1, 1]} : vector<12x64xf32> to vector<1x32xf32>
    %150 = vector.extract_strided_slice %0 {offsets = [9, 0], sizes = [1, 32], strides = [1, 1]} : vector<12x64xf32> to vector<1x32xf32>
    %cst_38 = arith.constant dense<0.000000e+00> : vector<16xf32>
    %151 = vector.multi_reduction <add>, %148, %cst_38 [1] : vector<16x32xf32> to vector<16xf32>
    %152 = vector.shape_cast %151 : vector<16xf32> to vector<16x1xf32>
    %cst_39 = arith.constant 3.200000e+01 : f32
    %153 = vector.broadcast %cst_39 : f32 to vector<16x1xf32>
    %154 = arith.divf %152, %153 : vector<16x1xf32>
    %155 = vector.broadcast %154 : vector<16x1xf32> to vector<16x32xf32>
    %156 = arith.subf %148, %155 : vector<16x32xf32>
    %157 = vector.broadcast %154 : vector<16x1xf32> to vector<16x32xf32>
    %158 = arith.subf %148, %157 : vector<16x32xf32>
    %159 = arith.mulf %156, %158 : vector<16x32xf32>
    %cst_40 = arith.constant dense<0.000000e+00> : vector<16xf32>
    %160 = vector.multi_reduction <add>, %159, %cst_40 [1] : vector<16x32xf32> to vector<16xf32>
    %161 = vector.shape_cast %160 : vector<16xf32> to vector<16x1xf32>
    %cst_41 = arith.constant 3.200000e+01 : f32
    %162 = vector.broadcast %cst_41 : f32 to vector<16x1xf32>
    %163 = arith.divf %161, %162 : vector<16x1xf32>
    %164 = vector.broadcast %154 : vector<16x1xf32> to vector<16x32xf32>
    %165 = arith.subf %148, %164 : vector<16x32xf32>
    %cst_42 = arith.constant 9.99999974E-6 : f32
    %166 = vector.broadcast %cst_42 : f32 to vector<16x1xf32>
    %167 = arith.addf %163, %166 : vector<16x1xf32>
    %168 = math.rsqrt %167 : vector<16x1xf32>
    %169 = vector.broadcast %168 : vector<16x1xf32> to vector<16x32xf32>
    %170 = arith.mulf %165, %169 : vector<16x32xf32>
    %171 = vector.broadcast %149 : vector<1x32xf32> to vector<16x32xf32>
    %172 = arith.mulf %170, %171 : vector<16x32xf32>
    %173 = vector.broadcast %150 : vector<1x32xf32> to vector<16x32xf32>
    %174 = arith.addf %172, %173 : vector<16x32xf32>
    %175 = arith.truncf %174 : vector<16x32xf32> to vector<16x32xbf16>
    %176 = vector.extract_strided_slice %13 {offsets = [0, 64], sizes = [32, 32], strides = [1, 1]} : vector<32x128xbf16> to vector<32x32xbf16>
    %cst_43 = arith.constant dense<0.000000e+00> : vector<16x32xf32>
    %177 = tpu.matmul %175, %176, %cst_43 {dimension_numbers = #tpu.dot_dimension_numbers<[1], [0], [0], [1], [0, 0, 1, 1], [], []>} : vector<16x32xbf16>, vector<32x32xbf16>, vector<16x32xf32> -> vector<16x32xf32>
    %178 = vector.extract_strided_slice %0 {offsets = [5, 0], sizes = [1, 32], strides = [1, 1]} : vector<12x64xf32> to vector<1x32xf32>
    %179 = vector.broadcast %178 : vector<1x32xf32> to vector<16x32xf32>
    %180 = arith.addf %177, %179 : vector<16x32xf32>
    %181 = math.tanh %180 : vector<16x32xf32>
    %182 = vector.extract_strided_slice %13 {offsets = [0, 96], sizes = [32, 32], strides = [1, 1]} : vector<32x128xbf16> to vector<32x32xbf16>
    %cst_44 = arith.constant dense<0.000000e+00> : vector<16x32xf32>
    %183 = tpu.matmul %175, %182, %cst_44 {dimension_numbers = #tpu.dot_dimension_numbers<[1], [0], [0], [1], [0, 0, 1, 1], [], []>} : vector<16x32xbf16>, vector<32x32xbf16>, vector<16x32xf32> -> vector<16x32xf32>
    %184 = vector.extract_strided_slice %0 {offsets = [11, 0], sizes = [1, 32], strides = [1, 1]} : vector<12x64xf32> to vector<1x32xf32>
    %185 = vector.broadcast %184 : vector<1x32xf32> to vector<16x32xf32>
    %186 = arith.addf %183, %185 : vector<16x32xf32>
    %cst_45 = arith.constant 0.000000e+00 : f32
    %187 = vector.broadcast %cst_45 : f32 to vector<16x32xf32>
    %188 = tpu.concatenate %174, %181, %186, %187 in 1 : vector<16x32xf32>, vector<16x32xf32>, vector<16x32xf32>, vector<16x32xf32> -> vector<16x128xf32>
    %c0_46 = arith.constant 0 : index
    %c0_47 = arith.constant 0 : index
    %189 = vector.load %arg8[%c0_46, %c0_47] : memref<16x128xf32, #tpu.memory_space<vmem>>, vector<16x128xf32>
    tpu.vector_store %arg8[%c0_46, %c0_47], %188 {strides = array<i32>} : memref<16x128xf32, #tpu.memory_space<vmem>>, vector<16x128xf32>,
    return
  }
}

</mosaic_0001>

<bundles_post_ra>
// kernel: forward.1
= control target key start
LH: loop header
LB: loop body
LE: loop exit
PB: predicated region body
PF: predicated region fallthrough
CT: control target
= control target key end

     0   :  { %v2139_v0 = vmov 0   ;;  %v2140_v9 = vmov 0.0   ;;  %v36_v17 = vlaneseq  ;;  %vm60_vm0 = vcmask 523264   ;;  %s2144_s16 = smov 120   ;;  %s2145_s17 = smov 96   ;;  %s2650_s0 = inlined_call_operand.vmem [shape: s32[16,1], index: 0, kind: input, shape index: {}]   ;;  %s2651_s2 = inlined_call_operand.vmem [shape: f32[64,32], index: 2, kind: input, shape index: {}]   ;;  %s2652_s4 = inlined_call_operand.vmem [shape: bf16[32,128], index: 4, kind: input, shape index: {}]   ;;  %s2653_s7 = inlined_call_operand.vmem [shape: f32[12,64], index: 7, kind: input, shape index: {}]   ;;  %s2654_s3 = inlined_call_operand.vmem [shape: f32[16,32], index: 3, kind: input, shape index: {}]   ;;  %s2655_s1 = inlined_call_operand.vmem [shape: f32[2,8], index: 1, kind: input, shape index: {}]   ;;  %s2656_s9 = inlined_call_operand.vmem [shape: f32[8,8,8], index: 9, kind: output, shape index: {1}]   ;;  %s2657_s5 = inlined_call_operand.vmem [shape: bf16[32,128], index: 5, kind: input, shape index: {}]   ;;  %s2658_s6 = inlined_call_operand.vmem [shape: bf16[64,32], index: 6, kind: input, shape index: {}]   ;;  %s2659_s8 = inlined_call_operand.vmem [shape: f32[16,128], index: 8, kind: output, shape index: {0}]  }
   0x1   :  { %2021 = vset.pattern.permute.xlu0 %v2139_v0  ;;  %v34_v1 = vld [vmem:[%s2650_s0] sm:$0xff]  ;;  %v51_v3 = vld [vmem:[%s2651_s2 + $0x8] sm:$0xff]  ;;  %v52_v4 = vld [vmem:[%s2651_s2 + $0x10] sm:$0xff]  ;;  %1844 = vmatprep.subr.bf16.mxu1 %v2140_v9  ;;  %vm2141_vm3 = vmmov 0   ;;  %vm171_vm4 = vcmask 261120   ;;  %s2146_s18 = smov 104  }
   0x2   :  { %v50_v2 = vld [vmem:[%s2651_s2] sm:$0xff]  ;;  %39 = vperm.xlu0 %2021, %v34_v1   ;;  %v53_v5 = vld [vmem:[%s2651_s2 + $0x18] sm:$0xff]  ;;  %v35_v6 = vld [vmem:[%s2650_s0 + $0x8] sm:$0xff]  ;;  %v37_v18 = vand.u32 127, %v36_v17  ;;  %v2250_v24 = vshrl.u32 %v36_v17, 7  ;;  %1848 = vmatprep.mubr.msk.bf16.mxu1 %vm2141_vm3, %v2140_v9  ;;  %vm355_vm5 = vcmask 64512  }
   0x3   :  { %v1992_v7 = vpack.c.bf16 %v51_v3, %v50_v2  ;;  %v1996_v8 = vpack.c.bf16 %v53_v5, %v52_v4  ;;  %v54_v10 = vld [vmem:[%s2651_s2 + $0x20] sm:$0xff]  ;;  %v55_v11 = vld [vmem:[%s2651_s2 + $0x28] sm:$0xff]  ;;  %v56_v13 = vld [vmem:[%s2651_s2 + $0x30] sm:$0xff]  ;;  %s2147_s19 = smov 64   ;;  %vm881_vm6 = vcmask 1043456   ;;  %s2150_s14 = smov 16  }
   0x4   :  { %v2000_v12 = vpack.c.bf16 %v55_v11, %v54_v10  ;;  %v57_v14 = vld [vmem:[%s2651_s2 + $0x38] sm:$0xff]  ;;  %v2236_v15 = vld [vmem:[%s2652_s4] sm:$0xff]   ;;  %v2248_v23 = vld [vmem:[%s2652_s4 + $0x8] sm:$0xff]   ;;  %v224_v25 = vsub.s32 1, %v2250_v24  ;;  %s2142_s4 = smov 32   ;;  %v2284_v35 = vsub.s32 0, %v2250_v24 }
   0x5   :  { %1993 = vmatprep.subr.bf16.mxu0 %v1992_v7  ;;  %v2004_v16 = vpack.c.bf16 %v57_v14, %v56_v13  ;;  %1845 = vmatpush3.bf16.msra.mxu1 %v2236_v15  ;;  %v2262_v26 = vld [vmem:[%s2653_s7] sm:$0xff]  ;;  %v59_v28 = vld [vmem:[%s2654_s3 + $0x8] sm:$0xff]  ;;  %s2151_s15 = smov 24   ;;  %vm1294_vm7 = vcmask 130048   ;;  %vm1297_vm8 = vcmask 195584   ;;  %vm1716_vm9 = vcmask 785408  }
   0x6   :  { %42 = vperm.xlu0 %2021, %v35_v6   ;;  %1995 = vmatpush3.bf16.msra.mxu0 %v1992_v7  ;;  %v225_v27 = vrot.slane %v2262_v26, %v224_v25  ;;  %v58_v29 = vld [vmem:[%s2654_s3] sm:$0xff]  ;;  %v219_v38 = vrot.slane %v2262_v26, %v2284_v35  ;;  %s2143_s3 = smov 112   ;;  %v234_v7 = vsub.s32 2, %v2250_v24 }
   0x7   :  { %1997 = vmatprep.subr.bf16.mxu0 %v1996_v8  ;;  %1846 = vmatprep.subr.bf16.mxu1 %v2140_v9 }
   0x8   :  { %227 = vrot.lane.b32.xlu1 %v225_v27, %s2142_s4 }
   0x9   :  { %1847 = vmatpush3.bf16.msra.mxu1 %v2248_v23 }
   0xa   :  { %1999 = vmatpush3.bf16.msra.mxu0 %v1996_v8  ;;  %1852 = vmatprep.subr.bf16.mxu1 %v2140_v9  ;;  %v235_v8 = vrot.slane %v2262_v26, %v234_v7 }
   0xb   :  { %2001 = vmatprep.subr.bf16.mxu0 %v2000_v12 }
   0xe   :  { %2003 = vmatpush3.bf16.msra.mxu0 %v2000_v12 }
   0xf   :  { %2005 = vmatprep.subr.bf16.mxu0 %v2004_v16 }
  0x12   :  { %2007 = vmatpush3.bf16.msra.mxu0 %v2004_v16 }
  0x13   :  { %1858 = vmatprep.subr.bf16.mxu0 %v2140_v9 }
  0x7a   :  { %v228_v36 = vpop.permute.xlu1 %227 }
  0x81   :  { %v40_v19 = vpop.permute.xlu0 %39 }
  0x82   :  { %vm44_vm1 = vcmp.eq.s32.totalorder %v37_v18, %v40_v19 }
  0x83   :  { %v1729_v20 = vsel %vm44_vm1, 1.0, %v2140_v9 }
  0x84   :  { %1841 = vmatprep.mubr.msk.f32.mxu0 %vm60_vm0, %v1729_v20 }
  0x85   :  { %v43_v21 = vpop.permute.xlu0 %42 }
  0x86   :  { %vm45_vm2 = vcmp.eq.s32.totalorder %v37_v18, %v43_v21 }
  0x87   :  { %v1730_v22 = vsel %vm45_vm2, 1.0, %v2140_v9 }
  0x88   :  { %1842 = vmatmul.mubr.msk.f32.vlgmr.msra.gmra.mrb[0].mxu0 %vm60_vm0, %v1730_v22 }
  0x89   :  { %1860 = vmatprep.mubr.msk.bf16.mxu0 %vm2141_vm3, %v2140_v9 }
 0x15b   :  { %v1843_v30 = vpop.f32.mrb[0].mxu0 }
 0x15c   :  { %v2274_v31 = vadd.f32 %v1843_v30, %v59_v28  ;;  %v133_v32 = vpop.f32.mrb[1].mxu0 }
 0x15d   :  { %v2276_v33 = vadd.f32 %v133_v32, %v58_v29 }
 0x15f   :  { %v142_v34 = vpack.c.bf16 %v2274_v31, %v2276_v33 }
 0x161   :  { %1849 = vmatmul.mubr.msk.bf16.vlgmr.msra.gmra.mrb[0].mxu1 %vm171_vm4, %v142_v34 }
 0x162   :  { %1854 = vmatprep.mubr.msk.bf16.mxu1 %vm2141_vm3, %v2140_v9 }
 0x234   :  { %v2286_v37 = vpop.f32.mrb[0].mxu1 }
 0x235   :  { %v1850_v39 = vpop.f32.mrb[1].mxu1  ;;  %v230_v41 = vadd.f32 %v228_v36, %v2286_v37  ;;  %v220_v45 = vadd.f32 %v219_v38, %v2286_v37 }
 0x236   :  { %v2290_v40 = vpop.f32.mrb[2].mxu1 }
 0x237   :  { %v221_v42 = vadd.f32 %v219_v38, %v2290_v40  ;;  %v231_v43 = vadd.f32 %v228_v36, %v2290_v40  ;;  %v1851_v44 = vpop.f32.mrb[3].mxu1  ;;  %v290_v48 = vpack.c.bf16 %v230_v41, %v230_v41  ;;  %v262_v0 = vpack.c.bf16 %v220_v45, %v220_v45 }
 0x239   :  { %v2027_v46 = vpack.i.bf16 %v231_v43, %v230_v41  ;;  %v2037_v47 = vpack.i.bf16 %v221_v42, %v220_v45  ;;  %v291_v49 = vpack.c.bf16 %v231_v43, %v231_v43  ;;  %v263_v4 = vpack.c.bf16 %v221_v42, %v221_v42 }
 0x23b   :  { %2028 = vrot.lane.b32.xlu0 %v2027_v46, %s2143_s3  ;;  %2023 = vrot.lane.b32.xlu1 %v2027_v46, %s2144_s16 }
 0x23f   :  { %353 = vrot.lane.b32.xlu0 %v290_v48, %s2145_s17  ;;  %2033 = vrot.lane.b32.xlu1 %v2027_v46, %s2146_s18 }
 0x243   :  { %403 = vrot.lane.b32.xlu1 %v291_v49, %s2145_s17 }
 0x2ad   :  { %v2029_v50 = vpop.permute.xlu0 %2028  ;;  %v2024_v51 = vpop.permute.xlu1 %2023 }
 0x2ae   :  { %v2026_v52 = vunpack.i.h.bf16 %v2024_v51  ;;  %v2025_v53 = vunpack.i.l.bf16 %v2024_v51  ;;  %v2030_v54 = vunpack.i.l.bf16 %v2029_v50  ;;  %v2031_v61 = vunpack.i.h.bf16 %v2029_v50 }
 0x2b0   :  { %v293_v55 = vpack.c.bf16 %v2026_v52, %v2026_v52  ;;  %v292_v56 = vpack.c.bf16 %v2025_v53, %v2025_v53  ;;  %v294_v60 = vpack.c.bf16 %v2030_v54, %v2030_v54  ;;  %v295_v2 = vpack.c.bf16 %v2031_v61, %v2031_v61  ;;  %v326_v53 = vld [vmem:[%s2655_s1] sm:$0x3] }
 0x2b1   :  { %v354_v57 = vpop.permute.xlu0 %353  ;;  %v2034_v58 = vpop.permute.xlu1 %2033  ;;  %v327_v54 = vsub.f32 1.0, %v326_v53 }
 0x2b2   :  { %v360_v59 = vsel %vm355_vm5, %v354_v57, 0  ;;  %452 = vrot.lane.b32.xlu0 %v292_v56, %s2145_s17  ;;  %501 = vrot.lane.b32.xlu1 %v293_v55, %s2145_s17  ;;  %v2036_v1 = vunpack.i.h.bf16 %v2034_v58  ;;  %v2035_v3 = vunpack.i.l.bf16 %v2034_v58 }
 0x2b3   :  { %1853 = vmatpush3.bf16.xpose.msra.mxu1 %v360_v59  ;;  %v328_v56 = vmul.f32 -1e+09, %v327_v54 }
 0x2b4   :  { %1864 = vmatprep.subr.bf16.mxu1 %v2140_v9  ;;  %v297_v5 = vpack.c.bf16 %v2036_v1, %v2036_v1  ;;  %v296_v6 = vpack.c.bf16 %v2035_v3, %v2035_v3 }
 0x2b5   :  { %v404_v62 = vpop.permute.xlu1 %403 }
 0x2b6   :  { %v409_v63 = vsel %vm355_vm5, %v404_v62, 0  ;;  %550 = vrot.lane.b32.xlu1 %v294_v60, %s2145_s17  ;;  %2038 = vrot.lane.b32.xlu0 %v2037_v47, %s2144_s16 }
 0x2b7   :  { %1859 = vmatpush3.bf16.xpose.msra.mxu0 %v409_v63 }
 0x2b8   :  { %1870 = vmatprep.subr.bf16.mxu0 %v2140_v9 }
 0x2ba   :  { %1855 = vmatmul.mubr.msk.bf16.vlgmr.msra.gmra.mrb[4].mxu1 %vm355_vm5, %v262_v0  ;;  %2043 = vrot.lane.b32.xlu1 %v2037_v47, %s2143_s3 }
 0x2bb   :  { %599 = vrot.lane.b32.xlu0 %v295_v2, %s2145_s17  ;;  %1866 = vmatprep.mubr.msk.bf16.mxu1 %vm2141_vm3, %v2140_v9 }
 0x2be   :  { %697 = vrot.lane.b32.xlu1 %v297_v5, %s2145_s17  ;;  %1861 = vmatmul.mubr.msk.bf16.vlgmr.msra.gmra.mrb[4].mxu0 %vm355_vm5, %v263_v4 }
 0x2bf   :  { %648 = vrot.lane.b32.xlu0 %v296_v6, %s2145_s17  ;;  %1872 = vmatprep.mubr.msk.bf16.mxu0 %vm2141_vm3, %v2140_v9 }
 0x2c3   :  { %2048 = vrot.lane.b32.xlu0 %v2037_v47, %s2146_s18 }
 0x2c7   :  { %237 = vrot.lane.b32.xlu0 %v235_v8, %s2147_s19 }
 0x324   :  { %v453_v10 = vpop.permute.xlu0 %452  ;;  %v502_v11 = vpop.permute.xlu1 %501 }
 0x325   :  { %v458_v12 = vsel %vm355_vm5, %v453_v10, 0  ;;  %v507_v13 = vsel %vm355_vm5, %v502_v11, 0 }
 0x326   :  { %1865 = vmatpush3.bf16.xpose.msra.mxu1 %v458_v12  ;;  %1871 = vmatpush3.bf16.xpose.msra.mxu0 %v507_v13 }
 0x327   :  { %1876 = vmatprep.subr.bf16.mxu1 %v2140_v9  ;;  %1882 = vmatprep.subr.bf16.mxu0 %v2140_v9 }
 0x328   :  { %v551_v14 = vpop.permute.xlu1 %550  ;;  %v2039_v16 = vpop.permute.xlu0 %2038 }
 0x329   :  { %v2041_v17 = vunpack.i.h.bf16 %v2039_v16  ;;  %v2040_v18 = vunpack.i.l.bf16 %v2039_v16  ;;  %v556_v22 = vsel %vm355_vm5, %v551_v14, 0 }
 0x32b   :  { %v265_v19 = vpack.c.bf16 %v2041_v17, %v2041_v17  ;;  %v264_v20 = vpack.c.bf16 %v2040_v18, %v2040_v18 }
 0x32c   :  { %v2044_v21 = vpop.permute.xlu1 %2043 }
 0x32d   :  { %v600_v27 = vpop.permute.xlu0 %599  ;;  %1867 = vmatmul.mubr.msk.bf16.vlgmr.msra.gmra.mrb[8].mxu1 %vm355_vm5, %v264_v20  ;;  %1873 = vmatmul.mubr.msk.bf16.vlgmr.msra.gmra.mrb[8].mxu0 %vm355_vm5, %v265_v19  ;;  %v2045_v29 = vunpack.i.l.bf16 %v2044_v21  ;;  %v2046_v30 = vunpack.i.h.bf16 %v2044_v21 }
 0x32e   :  { %v605_v28 = vsel %vm355_vm5, %v600_v27, 0  ;;  %1877 = vmatpush3.bf16.xpose.msra.mxu1 %v556_v22  ;;  %1878 = vmatprep.mubr.msk.bf16.mxu1 %vm2141_vm3, %v2140_v9 }
 0x32f   :  { %1883 = vmatpush3.bf16.xpose.msra.mxu0 %v605_v28  ;;  %1884 = vmatprep.mubr.msk.bf16.mxu0 %vm2141_vm3, %v2140_v9  ;;  %v266_v34 = vpack.c.bf16 %v2045_v29, %v2045_v29  ;;  %v267_v38 = vpack.c.bf16 %v2046_v30, %v2046_v30 }
 0x330   :  { %1888 = vmatprep.subr.bf16.mxu1 %v2140_v9  ;;  %1894 = vmatprep.subr.bf16.mxu0 %v2140_v9  ;;  %v698_v36 = vpop.permute.xlu1 %697 }
 0x331   :  { %v649_v32 = vpop.permute.xlu0 %648  ;;  %v703_v42 = vsel %vm355_vm5, %v698_v36, 0 }
 0x332   :  { %v654_v39 = vsel %vm355_vm5, %v649_v32, 0 }
 0x335   :  { %v2049_v41 = vpop.permute.xlu0 %2048  ;;  %1879 = vmatmul.mubr.msk.bf16.vlgmr.msra.gmra.mrb[12].mxu1 %vm355_vm5, %v266_v34 }
 0x336   :  { %1885 = vmatmul.mubr.msk.bf16.vlgmr.msra.gmra.mrb[12].mxu0 %vm355_vm5, %v267_v38  ;;  %1889 = vmatpush3.bf16.xpose.msra.mxu1 %v654_v39  ;;  %v2050_v43 = vunpack.i.l.bf16 %v2049_v41  ;;  %v2051_v44 = vunpack.i.h.bf16 %v2049_v41 }
 0x337   :  { %1895 = vmatpush3.bf16.xpose.msra.mxu0 %v703_v42  ;;  %1890 = vmatprep.mubr.msk.bf16.mxu1 %vm2141_vm3, %v2140_v9 }
 0x338   :  { %1896 = vmatprep.mubr.msk.bf16.mxu0 %vm2141_vm3, %v2140_v9  ;;  %1906 = vmatprep.subr.bf16.mxu0 %v2140_v9  ;;  %v268_v48 = vpack.c.bf16 %v2050_v43, %v2050_v43  ;;  %v269_v50 = vpack.c.bf16 %v2051_v44, %v2051_v44 }
 0x339   :  { %v238_v45 = vpop.permute.xlu0 %237  ;;  %1900 = vmatprep.subr.bf16.mxu1 %v2140_v9 }
 0x33a   :  { %v240_v46 = vadd.f32 %v238_v45, %v2286_v37  ;;  %v241_v47 = vadd.f32 %v238_v45, %v2290_v40  ;;  %v2148_v40 = vmov 1966171168  }
 0x33b   :  { %v331_v52 = vunpack.c.l.s4 %v2148_v40 }
 0x33c   :  { %v2057_v49 = vpack.i.bf16 %v241_v47, %v240_v46  ;;  %v319_v51 = vpack.c.bf16 %v241_v47, %v241_v47  ;;  %v318_v37 = vpack.c.bf16 %v240_v46, %v240_v46 }
 0x33d   :  { %1891 = vmatmul.mubr.msk.bf16.vlgmr.msra.gmra.mrb[16].mxu1 %vm355_vm5, %v268_v48  ;;  %v332_v55 = vunpack.c.0.s8 %v331_v52 }
 0x33e   :  { %2058 = vrot.lane.b32.xlu1 %v2057_v49, %s2143_s3  ;;  %2053 = vrot.lane.b32.xlu0 %v2057_v49, %s2144_s16 }
 0x33f   :  { %1897 = vmatmul.mubr.msk.bf16.vlgmr.msra.gmra.mrb[16].mxu0 %vm355_vm5, %v269_v50  ;;  %1902 = vmatprep.mubr.msk.bf16.mxu1 %vm2141_vm3, %v2140_v9  ;;  %v335_v57 = vsub.s32 %v332_v55, %v2250_v24 }
 0x340   :  { %1908 = vmatprep.mubr.msk.bf16.mxu0 %vm2141_vm3, %v2140_v9 }
 0x341   :  { %v336_v58 = vrot.slane %v328_v56, %v335_v57 }
 0x342   :  { %926 = vrot.lane.b32.xlu1 %v319_v51, %s2147_s19  ;;  %2063 = vrot.lane.b32.xlu0 %v2057_v49, %s2146_s18 }
 0x343   :  { %v344_v59 = vrot.slane %v336_v58, %v335_v57  ;;  %v337_v60 = vcombine.high %v336_v58, %v336_v58 }
 0x345   :  { %v2367_v61 = vrot.slane %v344_v59, %v2284_v35  ;;  %v351_v62 = vrot.slane %v337_v60, %v335_v57 }
 0x346   :  { %876 = vrot.lane.b32.xlu0 %v318_v37, %s2147_s19 }
 0x347   :  { %v2373_v5 = vrot.slane %v351_v62, %v2284_v35 }
 0x38d   :  { %v396_v63 = vpop.f32.mrb[4].mxu1 }
 0x38e   :  { %v745_v0 = vmul.f32 0.35355338, %v396_v63  ;;  %v1856_v1 = vpop.f32.mrb[5].mxu1 }
 0x38f   :  { %v399_v2 = vpop.f32.mrb[6].mxu1 }
 0x390   :  { %v1857_v3 = vpop.f32.mrb[7].mxu1  ;;  %v2370_v4 = vadd.f32 %v2367_v61, %v745_v0 }
 0x391   :  { %v445_v6 = vpop.f32.mrb[4].mxu0 }
 0x392   :  { %v746_v8 = vmul.f32 0.35355338, %v445_v6  ;;  %v1862_v10 = vpop.f32.mrb[5].mxu0  ;;  %v771_v11 = vsel %vm355_vm5, %v2370_v4, -inf }
 0x393   :  { %v448_v12 = vpop.f32.mrb[6].mxu0  ;;  %772 = vmax.xlane.f32.xlu1 %v771_v11 }
 0x394   :  { %v1863_v13 = vpop.f32.mrb[7].mxu0  ;;  %v2378_v14 = vadd.f32 %v2373_v5, %v746_v8 }
 0x396   :  { %v774_v16 = vsel %vm355_vm5, %v2378_v14, -inf }
 0x397   :  { %775 = vmax.xlane.f32.xlu0 %v774_v16 }
 0x3b0   :  { %v2382_v17 = vpop.permute.xlu1 %2058  ;;  %v2384_v18 = vpop.permute.xlu0 %2053 }
 0x3b1   :  { %v2056_v19 = vunpack.i.h.bf16 %v2384_v18 }
 0x3b3   :  { %v321_v20 = vpack.c.bf16 %v2056_v19, %v2056_v19 }
 0x3b4   :  { %v927_v21 = vpop.permute.xlu1 %926  ;;  %v2387_v22 = vpop.permute.xlu0 %2063 }
 0x3b5   :  { %v932_v27 = vsel %vm881_vm6, %v927_v21, 0  ;;  %1024 = vrot.lane.b32.xlu0 %v321_v20, %s2147_s19 }
 0x3b6   :  { %1907 = vmatpush3.bf16.msra.mxu0 %v932_v27 }
 0x3b7   :  { %1918 = vmatprep.subr.bf16.mxu0 %v2140_v9 }
 0x3b8   :  { %v877_v28 = vpop.permute.xlu0 %876 }
 0x3b9   :  { %v883_v29 = vsel %vm881_vm6, %v877_v28, 0  ;;  %v2055_v28 = vunpack.i.l.bf16 %v2384_v18 }
 0x3ba   :  { %1901 = vmatpush3.bf16.msra.mxu1 %v883_v29 }
 0x3bb   :  { %1912 = vmatprep.subr.bf16.mxu1 %v2140_v9  ;;  %v320_v29 = vpack.c.bf16 %v2055_v28, %v2055_v28 }
 0x400   :  { %v494_v30 = vpop.f32.mrb[8].mxu1  ;;  %v543_v32 = vpop.f32.mrb[8].mxu0 }
 0x401   :  { %v747_v34 = vmul.f32 0.35355338, %v494_v30  ;;  %v748_v36 = vmul.f32 0.35355338, %v543_v32  ;;  %v1868_v38 = vpop.f32.mrb[9].mxu1  ;;  %v1874_v39 = vpop.f32.mrb[9].mxu0 }
 0x402   :  { %v497_v41 = vpop.f32.mrb[10].mxu1  ;;  %v546_v42 = vpop.f32.mrb[10].mxu0  ;;  %v2060_v39 = vunpack.i.l.bf16 %v2382_v17 }
 0x403   :  { %v1869_v43 = vpop.f32.mrb[11].mxu1  ;;  %v1875_v44 = vpop.f32.mrb[11].mxu0  ;;  %v2395_v45 = vadd.f32 %v2367_v61, %v747_v34  ;;  %v2400_v47 = vadd.f32 %v2373_v5, %v748_v36  ;;  %v2061_v36 = vunpack.i.h.bf16 %v2382_v17 }
 0x404   :  { %v322_v41 = vpack.c.bf16 %v2060_v39, %v2060_v39 }
 0x405   :  { %v777_v46 = vsel %vm355_vm5, %v2395_v45, -inf  ;;  %v780_v37 = vsel %vm355_vm5, %v2400_v47, -inf }
 0x406   :  { %778 = vmax.xlane.f32.xlu1 %v777_v46 }
 0x408   :  { %v592_v48 = vpop.f32.mrb[12].mxu1 }
 0x409   :  { %v749_v49 = vmul.f32 0.35355338, %v592_v48  ;;  %v641_v50 = vpop.f32.mrb[12].mxu0  ;;  %v1880_v51 = vpop.f32.mrb[13].mxu1 }
 0x40a   :  { %v750_v40 = vmul.f32 0.35355338, %v641_v50  ;;  %v1886_v52 = vpop.f32.mrb[13].mxu0  ;;  %781 = vmax.xlane.f32.xlu1 %v780_v37  ;;  %v595_v53 = vpop.f32.mrb[14].mxu1 }
 0x40b   :  { %v644_v54 = vpop.f32.mrb[14].mxu0  ;;  %v1881_v55 = vpop.f32.mrb[15].mxu1  ;;  %v767_v56 = vadd.f32 %v2367_v61, %v749_v49 }
 0x40c   :  { %v1887_v57 = vpop.f32.mrb[15].mxu0  ;;  %v768_v59 = vadd.f32 %v2373_v5, %v750_v40 }
 0x40d   :  { %v783_v58 = vsel %vm355_vm5, %v767_v56, -inf }
 0x40e   :  { %784 = vmax.xlane.f32.xlu1 %v783_v58  ;;  %v786_v0 = vsel %vm355_vm5, %v768_v59, -inf }
 0x410   :  { %v690_v60 = vpop.f32.mrb[16].mxu1 }
 0x411   :  { %v751_v62 = vmul.f32 0.35355338, %v690_v60  ;;  %v1892_v63 = vpop.f32.mrb[17].mxu1 }
 0x412   :  { %v739_v1 = vpop.f32.mrb[16].mxu0  ;;  %787 = vmax.xlane.f32.xlu1 %v786_v0  ;;  %v693_v2 = vpop.f32.mrb[18].mxu1 }
 0x413   :  { %v752_v3 = vmul.f32 0.35355338, %v739_v1  ;;  %v1898_v6 = vpop.f32.mrb[17].mxu0  ;;  %v1893_v8 = vpop.f32.mrb[19].mxu1  ;;  %v769_v10 = vadd.f32 %v2367_v61, %v751_v62 }
 0x414   :  { %v742_v11 = vpop.f32.mrb[18].mxu0 }
 0x415   :  { %v1899_v12 = vpop.f32.mrb[19].mxu0  ;;  %v789_v13 = vsel %vm355_vm5, %v769_v10, -inf  ;;  %v770_v16 = vadd.f32 %v2373_v5, %v752_v3  ;;  %v2065_v11 = vunpack.i.l.bf16 %v2387_v22 }
 0x416   :  { %790 = vmax.xlane.f32.xlu1 %v789_v13  ;;  %v2066_v12 = vunpack.i.h.bf16 %v2387_v22 }
 0x417   :  { %v792_v19 = vsel %vm355_vm5, %v770_v16, -inf  ;;  %v324_v13 = vpack.c.bf16 %v2065_v11, %v2065_v11 }
 0x41a   :  { %793 = vmax.xlane.f32.xlu1 %v792_v19 }
 0x420   :  { %v773_v20 = vpop.xlane.xlu1 %772 }
 0x421   :  { %v795_v21 = vsub.f32 %v2370_v4, %v773_v20  ;;  %v323_v4 = vpack.c.bf16 %v2061_v36, %v2061_v36 }
 0x423   :  { %v803_v27 = vmul.f32 1.442695, %v795_v21 }
 0x424   :  { %v776_v5 = vpop.xlane.xlu0 %775 }
 0x425   :  { %2090 = vpow2.f32 %v803_v27  ;;  %v796_v32 = vsub.f32 %v2378_v14, %v776_v5 }
 0x427   :  { %v805_v34 = vmul.f32 1.442695, %v796_v32 }
 0x428   :  { %v1025_v8 = vpop.permute.xlu0 %1024 }
 0x429   :  { %2092 = vpow2.f32 %v805_v34 }
 0x42b   :  { %975 = vrot.lane.b32.xlu1 %v320_v29, %s2147_s19 }
 0x42f   :  { %v2415_v61 = vpop.eup %2090 }
 0x430   :  { %v819_v30 = vsel %vm355_vm5, %v2415_v61, 0.0 }
 0x431   :  { %820 = vadd.xlane.f32.xlu0 %v819_v30  ;;  %v1030_v30 = vsel %vm881_vm6, %v1025_v8, 0 }
 0x433   :  { %v2422_v18 = vpop.eup %2092 }
 0x434   :  { %v822_v38 = vsel %vm355_vm5, %v2422_v18, 0.0 }
 0x447   :  { %1122 = vrot.lane.b32.xlu0 %v323_v4, %s2147_s19 }
 0x44f   :  { %823 = vadd.xlane.f32.xlu1 %v822_v38 }
 0x460   :  { %1073 = vrot.lane.b32.xlu1 %v322_v41, %s2147_s19 }
 0x493   :  { %v779_v42 = vpop.xlane.xlu1 %778 }
 0x494   :  { %v797_v14 = vsub.f32 %v2395_v45, %v779_v42 }
 0x496   :  { %v807_v43 = vmul.f32 1.442695, %v797_v14 }
 0x497   :  { %v782_v44 = vpop.xlane.xlu1 %781 }
 0x498   :  { %2094 = vpow2.f32 %v807_v43  ;;  %v798_v46 = vsub.f32 %v2400_v47, %v782_v44 }
 0x49a   :  { %v809_v48 = vmul.f32 1.442695, %v798_v46 }
 0x49b   :  { %v785_v49 = vpop.xlane.xlu1 %784 }
 0x49c   :  { %2096 = vpow2.f32 %v809_v48  ;;  %v799_v50 = vsub.f32 %v767_v56, %v785_v49 }
 0x49e   :  { %v811_v51 = vmul.f32 1.442695, %v799_v50 }
 0x49f   :  { %v788_v37 = vpop.xlane.xlu1 %787 }
 0x4a0   :  { %2098 = vpow2.f32 %v811_v51  ;;  %v800_v40 = vsub.f32 %v768_v59, %v788_v37 }
 0x4a2   :  { %v2430_v17 = vpop.eup %2094  ;;  %v813_v52 = vmul.f32 1.442695, %v800_v40 }
 0x4a3   :  { %v791_v53 = vpop.xlane.xlu1 %790  ;;  %v825_v45 = vsel %vm355_vm5, %v2430_v17, 0.0 }
 0x4a4   :  { %2100 = vpow2.f32 %v813_v52  ;;  %v801_v54 = vsub.f32 %v769_v10, %v791_v53  ;;  %826 = vadd.xlane.f32.xlu0 %v825_v45 }
 0x4a6   :  { %v2434_v55 = vpop.eup %2096  ;;  %v815_v47 = vmul.f32 1.442695, %v801_v54 }
 0x4a7   :  { %v794_v57 = vpop.xlane.xlu1 %793  ;;  %v828_v56 = vsel %vm355_vm5, %v2434_v55, 0.0 }
 0x4a8   :  { %2102 = vpow2.f32 %v815_v47  ;;  %v802_v58 = vsub.f32 %v770_v16, %v794_v57  ;;  %829 = vadd.xlane.f32.xlu0 %v828_v56  ;;  %v325_v16 = vpack.c.bf16 %v2066_v12, %v2066_v12 }
 0x4aa   :  { %v2438_v59 = vpop.eup %2098  ;;  %v817_v60 = vmul.f32 1.442695, %v802_v58 }
 0x4ab   :  { %v831_v62 = vsel %vm355_vm5, %v2438_v59, 0.0  ;;  %v976_v21 = vpop.permute.xlu1 %975 }
 0x4ac   :  { %2104 = vpow2.f32 %v817_v60  ;;  %832 = vadd.xlane.f32.xlu0 %v831_v62  ;;  %v981_v22 = vsel %vm881_vm6, %v976_v21, 0 }
 0x4ae   :  { %v2442_v63 = vpop.eup %2100 }
 0x4af   :  { %v834_v0 = vsel %vm355_vm5, %v2442_v63, 0.0 }
 0x4b0   :  { %835 = vadd.xlane.f32.xlu0 %v834_v0 }
 0x4b2   :  { %v2446_v1 = vpop.eup %2102 }
 0x4b3   :  { %v837_v2 = vsel %vm355_vm5, %v2446_v1, 0.0 }
 0x4b4   :  { %838 = vadd.xlane.f32.xlu0 %v837_v2 }
 0x4b6   :  { %v2450_v3 = vpop.eup %2104 }
 0x4b7   :  { %v840_v6 = vsel %vm355_vm5, %v2450_v3, 0.0 }
 0x4b8   :  { %841 = vadd.xlane.f32.xlu1 %v840_v6 }
 0x4be   :  { %v821_v10 = vpop.xlane.xlu0 %820 }
 0x4bf   :  { %2106 = vrcp.f32 %v821_v10 }
 0x4c2   :  { %v1123_v5 = vpop.permute.xlu0 %1122 }
 0x4c3   :  { %v1128_v49 = vsel %vm881_vm6, %v1123_v5, 0 }
 0x4c9   :  { %v2107_v19 = vpop.eup %2106  ;;  %1171 = vrot.lane.b32.xlu1 %v324_v13, %s2147_s19 }
 0x4ca   :  { %v844_v20 = vmul.f32 %v2107_v19, %v2415_v61  ;;  %1220 = vrot.lane.b32.xlu0 %v325_v16, %s2147_s19 }
 0x4cc   :  { %859 = vst.msk [vmem:[%s2656_s9] sm:$0xff] %vm355_vm5, %v844_v20  ;;  %v867_v27 = vpack.c.bf16 %v844_v20, %v844_v20 }
 0x4cd   :  { %1305 = vrot.lane.b32.xlu1 %v2236_v15, %s2142_s4 }
 0x4ce   :  { %1903 = vmatmul.mubr.msk.bf16.vlgmr.msra.gmra.mrb[20].mxu1 %vm355_vm5, %v867_v27 }
 0x4cf   :  { %1913 = vmatpush3.bf16.msra.mxu1 %v981_v22  ;;  %1914 = vmatprep.mubr.msk.bf16.mxu1 %vm2141_vm3, %v2140_v9 }
 0x4d0   :  { %1924 = vmatprep.subr.bf16.mxu1 %v2140_v9 }
 0x4dc   :  { %v824_v28 = vpop.xlane.xlu1 %823 }
 0x4dd   :  { %2108 = vrcp.f32 %v824_v28 }
 0x4e0   :  { %v1074_v39 = vpop.permute.xlu1 %1073 }
 0x4e1   :  { %v1079_v14 = vsel %vm881_vm6, %v1074_v39, 0 }
 0x4e7   :  { %v2109_v29 = vpop.eup %2108 }
 0x4e8   :  { %v846_v61 = vmul.f32 %v2109_v29, %v2422_v18 }
 0x4ea   :  { %860 = vst.msk [vmem:[%s2656_s9 + $0x8] sm:$0xff] %vm355_vm5, %v846_v61  ;;  %v868_v15 = vpack.c.bf16 %v846_v61, %v846_v61 }
 0x4ec   :  { %1909 = vmatmul.mubr.msk.bf16.vlgmr.msra.gmra.mrb[20].mxu0 %vm355_vm5, %v868_v15 }
 0x4ed   :  { %1919 = vmatpush3.bf16.msra.mxu0 %v1030_v30  ;;  %1920 = vmatprep.mubr.msk.bf16.mxu0 %vm2141_vm3, %v2140_v9 }
 0x4ee   :  { %1930 = vmatprep.subr.bf16.mxu0 %v2140_v9 }
 0x531   :  { %v827_v32 = vpop.xlane.xlu0 %826 }
 0x532   :  { %2110 = vrcp.f32 %v827_v32 }
 0x535   :  { %v830_v34 = vpop.xlane.xlu0 %829 }
 0x536   :  { %2112 = vrcp.f32 %v830_v34 }
 0x539   :  { %v833_v36 = vpop.xlane.xlu0 %832 }
 0x53a   :  { %2114 = vrcp.f32 %v833_v36 }
 0x53c   :  { %v2111_v4 = vpop.eup %2110 }
 0x53d   :  { %v848_v18 = vmul.f32 %v2111_v4, %v2430_v17  ;;  %v836_v38 = vpop.xlane.xlu0 %835 }
 0x53e   :  { %2116 = vrcp.f32 %v836_v38 }
 0x53f   :  { %861 = vst.msk [vmem:[%s2656_s9 + $0x10] sm:$0xff] %vm355_vm5, %v848_v18  ;;  %v869_v41 = vpack.c.bf16 %v848_v18, %v848_v18 }
 0x540   :  { %v2113_v42 = vpop.eup %2112 }
 0x541   :  { %v850_v43 = vmul.f32 %v2113_v42, %v2434_v55  ;;  %v839_v44 = vpop.xlane.xlu0 %838  ;;  %1915 = vmatmul.mubr.msk.bf16.vlgmr.msra.gmra.mrb[24].mxu1 %vm355_vm5, %v869_v41 }
 0x542   :  { %2118 = vrcp.f32 %v839_v44  ;;  %1925 = vmatpush3.bf16.msra.mxu1 %v1079_v14  ;;  %1926 = vmatprep.mubr.msk.bf16.mxu1 %vm2141_vm3, %v2140_v9 }
 0x543   :  { %862 = vst.msk [vmem:[%s2656_s9 + $0x18] sm:$0xff] %vm355_vm5, %v850_v43  ;;  %v870_v46 = vpack.c.bf16 %v850_v43, %v850_v43  ;;  %1936 = vmatprep.subr.bf16.mxu1 %v2140_v9 }
 0x544   :  { %v2115_v48 = vpop.eup %2114 }
 0x545   :  { %v852_v50 = vmul.f32 %v2115_v48, %v2438_v59  ;;  %1921 = vmatmul.mubr.msk.bf16.vlgmr.msra.gmra.mrb[24].mxu0 %vm355_vm5, %v870_v46  ;;  %v842_v51 = vpop.xlane.xlu1 %841  ;;  %v1221_v53 = vpop.permute.xlu0 %1220 }
 0x546   :  { %1931 = vmatpush3.bf16.msra.mxu0 %v1128_v49  ;;  %2120 = vrcp.f32 %v842_v51  ;;  %1932 = vmatprep.mubr.msk.bf16.mxu0 %vm2141_vm3, %v2140_v9  ;;  %v1226_v57 = vsel %vm881_vm6, %v1221_v53, 0 }
 0x547   :  { %863 = vst.msk [vmem:[%s2656_s9 + $0x20] sm:$0xff] %vm355_vm5, %v852_v50  ;;  %v871_v37 = vpack.c.bf16 %v852_v50, %v852_v50  ;;  %1942 = vmatprep.subr.bf16.mxu0 %v2140_v9 }
 0x548   :  { %v2117_v40 = vpop.eup %2116 }
 0x549   :  { %v854_v17 = vmul.f32 %v2117_v40, %v2442_v63  ;;  %1927 = vmatmul.mubr.msk.bf16.vlgmr.msra.gmra.mrb[28].mxu1 %vm355_vm5, %v871_v37  ;;  %v1172_v52 = vpop.permute.xlu1 %1171 }
 0x54a   :  { %v1177_v45 = vsel %vm881_vm6, %v1172_v52, 0  ;;  %1938 = vmatprep.mubr.msk.bf16.mxu1 %vm2141_vm3, %v2140_v9 }
 0x54b   :  { %864 = vst.msk [vmem:[%s2656_s9 + $0x28] sm:$0xff] %vm355_vm5, %v854_v17  ;;  %1937 = vmatpush3.bf16.msra.mxu1 %v1177_v45  ;;  %v872_v54 = vpack.c.bf16 %v854_v17, %v854_v17 }
 0x54c   :  { %v2119_v55 = vpop.eup %2118  ;;  %1948 = vmatprep.subr.bf16.mxu1 %v2140_v9 }
 0x54d   :  { %v856_v47 = vmul.f32 %v2119_v55, %v2446_v1  ;;  %1933 = vmatmul.mubr.msk.bf16.vlgmr.msra.gmra.mrb[28].mxu0 %vm355_vm5, %v872_v54  ;;  %v1306_v10 = vpop.permute.xlu1 %1305 }
 0x54e   :  { %1943 = vmatpush3.bf16.msra.mxu0 %v1226_v57  ;;  %1944 = vmatprep.mubr.msk.bf16.mxu0 %vm2141_vm3, %v2140_v9 }
 0x54f   :  { %865 = vst.msk [vmem:[%s2656_s9 + $0x30] sm:$0xff] %vm355_vm5, %v856_v47  ;;  %v873_v56 = vpack.c.bf16 %v856_v47, %v856_v47  ;;  %1956 = vmatprep.subr.bf16.mxu0 %v2140_v9 }
 0x550   :  { %v2121_v58 = vpop.eup %2120 }
 0x551   :  { %v858_v59 = vmul.f32 %v2121_v58, %v2450_v3  ;;  %1939 = vmatmul.mubr.msk.bf16.vlgmr.msra.gmra.mrb[32].mxu1 %vm355_vm5, %v873_v56  ;;  %v1303_v58 = vsub.s32 3, %v2250_v24 }
 0x552   :  { %1952 = vmatprep.mubr.msk.bf16.mxu1 %vm2141_vm3, %v2140_v9  ;;  %1949 = vmatpush3.bf16.msra.mxu1 %v1306_v10 }
 0x553   :  { %866 = vst.msk [vmem:[%s2656_s9 + $0x38] sm:$0xff] %vm355_vm5, %v858_v59  ;;  %v874_v60 = vpack.c.bf16 %v858_v59, %v858_v59  ;;  %1950 = vmatprep.subr.bf16.mxu1 %v2140_v9  ;;  %s2149_s9 = smov 8   ;;  %v1304_v59 = vrot.slane %v2262_v26, %v1303_v58 }
 0x555   :  { %1945 = vmatmul.mubr.msk.bf16.vlgmr.msra.gmra.mrb[32].mxu0 %vm355_vm5, %v874_v60 }
 0x556   :  { %1960 = vmatprep.mubr.msk.bf16.mxu0 %vm2141_vm3, %v2140_v9 }
 0x5a1   :  { %v919_v62 = vpop.f32.mrb[20].mxu1 }
 0x5a2   :  { %v1904_v63 = vpop.f32.mrb[21].mxu1 }
 0x5a3   :  { %v922_v0 = vpop.f32.mrb[22].mxu1 }
 0x5a4   :  { %v1905_v1 = vpop.f32.mrb[23].mxu1 }
 0x5bf   :  { %v968_v2 = vpop.f32.mrb[20].mxu0 }
 0x5c0   :  { %v1910_v3 = vpop.f32.mrb[21].mxu0 }
 0x5c1   :  { %v971_v6 = vpop.f32.mrb[22].mxu0 }
 0x5c2   :  { %v1911_v8 = vpop.f32.mrb[23].mxu0 }
 0x614   :  { %v1017_v11 = vpop.f32.mrb[24].mxu1 }
 0x615   :  { %v1916_v12 = vpop.f32.mrb[25].mxu1 }
 0x616   :  { %v1020_v13 = vpop.f32.mrb[26].mxu1 }
 0x617   :  { %v1917_v16 = vpop.f32.mrb[27].mxu1 }
 0x618   :  { %v1066_v19 = vpop.f32.mrb[24].mxu0 }
 0x619   :  { %v2067_v20 = vpack.i.bf16 %v1066_v19, %v1017_v11  ;;  %v1922_v21 = vpop.f32.mrb[25].mxu0 }
 0x61a   :  { %v1069_v27 = vpop.f32.mrb[26].mxu0 }
 0x61b   :  { %v1923_v22 = vpop.f32.mrb[27].mxu0  ;;  %2068 = vrot.lane.b32.xlu0 %v2067_v20, %s2149_s9 }
 0x61c   :  { %v1115_v28 = vpop.f32.mrb[28].mxu1  ;;  %v2564_v22 = vld [vmem:[%s2657_s5 + $0x8] sm:$0xff]  }
 0x61d   :  { %v1928_v29 = vpop.f32.mrb[29].mxu1 }
 0x61e   :  { %v1118_v61 = vpop.f32.mrb[30].mxu1 }
 0x61f   :  { %v1929_v15 = vpop.f32.mrb[31].mxu1 }
 0x620   :  { %v1164_v30 = vpop.f32.mrb[28].mxu0 }
 0x621   :  { %v2072_v5 = vpack.i.bf16 %v1164_v30, %v1115_v28  ;;  %v1934_v32 = vpop.f32.mrb[29].mxu0 }
 0x622   :  { %v1167_v34 = vpop.f32.mrb[30].mxu0  ;;  %v1386_v32 = vsub.s32 6, %v2250_v24 }
 0x623   :  { %v1935_v36 = vpop.f32.mrb[31].mxu0  ;;  %2073 = vrot.lane.b32.xlu1 %v2072_v5, %s2150_s14 }
 0x624   :  { %v1213_v4 = vpop.f32.mrb[32].mxu1  ;;  %v2573_v36 = vld [vmem:[%s2653_s7] sm:$0xff] }
 0x625   :  { %v1940_v18 = vpop.f32.mrb[33].mxu1 }
 0x626   :  { %v1216_v38 = vpop.f32.mrb[34].mxu1 }
 0x627   :  { %v1941_v39 = vpop.f32.mrb[35].mxu1  ;;  %1307 = vrot.lane.b32.xlu1 %v2248_v23, %s2142_s4  ;;  %v1392_v38 = vsub.s32 7, %v2250_v24 }
 0x628   :  { %v1262_v41 = vpop.f32.mrb[32].mxu0 }
 0x629   :  { %v2077_v42 = vpack.i.bf16 %v1262_v41, %v1213_v4  ;;  %v1946_v14 = vpop.f32.mrb[33].mxu0  ;;  %v1387_v4 = vrot.slane %v2573_v36, %v1386_v32 }
 0x62a   :  { %v1265_v43 = vpop.f32.mrb[34].mxu0  ;;  %v1393_v14 = vrot.slane %v2573_v36, %v1392_v38 }
 0x62b   :  { %v1947_v44 = vpop.f32.mrb[35].mxu0  ;;  %2078 = vrot.lane.b32.xlu0 %v2077_v42, %s2151_s15 }
 0x68d   :  { %v2069_v48 = vpop.permute.xlu0 %2068 }
 0x68e   :  { %v2071_v50 = vunpack.i.h.bf16 %v2069_v48  ;;  %v2070_v51 = vunpack.i.l.bf16 %v2069_v48 }
 0x690   :  { %v1293_v17 = vsel %vm355_vm5, %v968_v2, %v2071_v50  ;;  %v1292_v52 = vsel %vm355_vm5, %v919_v62, %v2070_v51  ;;  %v2087_v50 = vld [vmem:[%s2658_s6 + $0x8] sm:$0xff]   ;;  %v2088_v51 = vld [vmem:[%s2658_s6 + $0x10] sm:$0xff]  }
 0x695   :  { %v2074_v46 = vpop.permute.xlu1 %2073 }
 0x696   :  { %v2076_v37 = vunpack.i.h.bf16 %v2074_v46  ;;  %v2075_v40 = vunpack.i.l.bf16 %v2074_v46 }
 0x698   :  { %v1296_v54 = vsel %vm1294_vm7, %v1293_v17, %v2076_v37  ;;  %v1295_v55 = vsel %vm1294_vm7, %v1292_v52, %v2075_v40  ;;  %v2089_v37 = vld [vmem:[%s2658_s6 + $0x18] sm:$0xff]   ;;  %v2599_v40 = vld [vmem:[%s2653_s7 + $0x8] sm:$0xf] }
 0x699   :  { %v1308_v49 = vpop.permute.xlu1 %1307 }
 0x69a   :  { %1951 = vmatpush3.bf16.msra.mxu1 %v1308_v49  ;;  %v2086_v49 = vld [vmem:[%s2658_s6] sm:$0xff]  }
 0x69b   :  { %1964 = vmatprep.subr.bf16.mxu1 %v2140_v9 }
 0x69d   :  { %v2079_v23 = vpop.permute.xlu0 %2078 }
 0x69e   :  { %v2081_v53 = vunpack.i.h.bf16 %v2079_v23  ;;  %v2080_v45 = vunpack.i.l.bf16 %v2079_v23  ;;  %v1400_v23 = vrot.slane %v2599_v40, %v234_v7 }
 0x6a0   :  { %v1299_v47 = vsel %vm1297_vm8, %v1296_v54, %v2081_v53  ;;  %v1298_v57 = vsel %vm1297_vm8, %v1295_v55, %v2080_v45 }
 0x6a1   :  { %v1300_v56 = vpack.c.bf16 %v1299_v47, %v1298_v57 }
 0x6a3   :  { %1953 = vmatmul.mubr.msk.bf16.vlgmr.msra.gmra.mrb[36].mxu1 %vm171_vm4, %v1300_v56 }
 0x6a4   :  { %1972 = vmatprep.mubr.msk.bf16.mxu1 %vm2141_vm3, %v2140_v9  ;;  %1965 = vmatpush3.bf16.msra.mxu1 %v2086_v49 }
 0x6a5   :  { %1966 = vmatprep.subr.bf16.mxu1 %v2140_v9 }
 0x6a8   :  { %1967 = vmatpush3.bf16.msra.mxu1 %v2087_v50 }
 0x6a9   :  { %1968 = vmatprep.subr.bf16.mxu1 %v2140_v9 }
 0x6ac   :  { %1969 = vmatpush3.bf16.msra.mxu1 %v2088_v51 }
 0x6ad   :  { %1970 = vmatprep.subr.bf16.mxu1 %v2140_v9 }
 0x6b0   :  { %1971 = vmatpush3.bf16.msra.mxu1 %v2089_v37 }
 0x776   :  { %v1348_v60 = vpop.f32.mrb[36].mxu1 }
 0x777   :  { %v1349_v62 = vadd.f32 %v1348_v60, %v1304_v59  ;;  %v1954_v63 = vpop.f32.mrb[37].mxu1 }
 0x778   :  { %v1351_v0 = vpop.f32.mrb[38].mxu1 }
 0x779   :  { %v1352_v1 = vadd.f32 %v1351_v0, %v1304_v59  ;;  %v1955_v2 = vpop.f32.mrb[39].mxu1  ;;  %v1355_v3 = vadd.f32 %v1349_v62, %v2276_v33 }
 0x77b   :  { %v1357_v6 = vsel %vm171_vm4, %v1355_v3, 0.0  ;;  %v1356_v8 = vadd.f32 %v1352_v1, %v2274_v31  ;;  %v2558_v31 = vld [vmem:[%s2657_s5] sm:$0xff]  }
 0x77c   :  { %1358 = vadd.xlane.f32.xlu0 %v1357_v6  ;;  %1957 = vmatpush3.bf16.msra.mxu0 %v2558_v31 }
 0x77d   :  { %v1360_v10 = vsel %vm171_vm4, %v1356_v8, 0.0  ;;  %1958 = vmatprep.subr.bf16.mxu0 %v2140_v9 }
 0x77e   :  { %1361 = vadd.xlane.f32.xlu1 %v1360_v10 }
 0x780   :  { %1959 = vmatpush3.bf16.msra.mxu0 %v2564_v22 }
 0x781   :  { %1976 = vmatprep.subr.bf16.mxu0 %v2140_v9 }
 0x809   :  { %v1359_v11 = vpop.xlane.xlu0 %1358 }
 0x80a   :  { %v1364_v12 = vmul.f32 0.03125, %v1359_v11 }
 0x80b   :  { %v1362_v13 = vpop.xlane.xlu1 %1361 }
 0x80c   :  { %v1366_v26 = vsub.f32 %v1355_v3, %v1364_v12  ;;  %v1365_v16 = vmul.f32 0.03125, %v1362_v13 }
 0x80e   :  { %v1367_v19 = vsub.f32 %v1356_v8, %v1365_v16  ;;  %v1368_v20 = vmul.f32 %v1366_v26, %v1366_v26  ;;  %v1478_v16 = vsub.s32 4, %v2250_v24 }
 0x810   :  { %v1370_v21 = vsel %vm171_vm4, %v1368_v20, 0.0  ;;  %v1369_v27 = vmul.f32 %v1367_v19, %v1367_v19 }
 0x811   :  { %1371 = vadd.xlane.f32.xlu0 %v1370_v21 }
 0x812   :  { %v1373_v33 = vsel %vm171_vm4, %v1369_v27, 0.0 }
 0x815   :  { %1374 = vadd.xlane.f32.xlu0 %v1373_v33 }
 0x89e   :  { %v1372_v28 = vpop.xlane.xlu0 %1371 }
 0x89f   :  { %v1376_v29 = vmul.f32 0.03125, %v1372_v28 }
 0x8a1   :  { %v1378_v61 = vadd.f32 1e-05, %v1376_v29 }
 0x8a2   :  { %v1375_v15 = vpop.xlane.xlu0 %1374 }
 0x8a3   :  { %2122 = vrsqrt.f32 %v1378_v61  ;;  %v1377_v30 = vmul.f32 0.03125, %v1375_v15 }
 0x8a5   :  { %v1379_v5 = vadd.f32 1e-05, %v1377_v30 }
 0x8a7   :  { %2124 = vrsqrt.f32 %v1379_v5 }
 0x8ad   :  { %v2123_v34 = vpop.eup %2122 }
 0x8ae   :  { %v1382_v18 = vmul.f32 %v2123_v34, %v1366_v26 }
 0x8b0   :  { %v1388_v41 = vmul.f32 %v1387_v4, %v1382_v18 }
 0x8b1   :  { %v2125_v39 = vpop.eup %2124 }
 0x8b2   :  { %v1383_v42 = vmul.f32 %v2125_v39, %v1367_v19  ;;  %v1394_v44 = vadd.f32 %v1393_v14, %v1388_v41  ;;  %v1479_v19 = vrot.slane %v2573_v36, %v1478_v16 }
 0x8b4   :  { %v1389_v43 = vmul.f32 %v1387_v4, %v1383_v42 }
 0x8b6   :  { %v1395_v46 = vadd.f32 %v1393_v14, %v1389_v43 }
 0x8b8   :  { %v1396_v48 = vpack.c.bf16 %v1395_v46, %v1394_v44 }
 0x8ba   :  { %1961 = vmatmul.mubr.msk.bf16.vlgmr.msra.gmra.mrb[36].mxu0 %vm171_vm4, %v1396_v48 }
 0x8bb   :  { %1980 = vmatprep.mubr.msk.bf16.mxu0 %vm2141_vm3, %v2140_v9 }
 0x98d   :  { %v1450_v17 = vpop.f32.mrb[36].mxu0 }
 0x98e   :  { %v1451_v52 = vadd.f32 %v1450_v17, %v1400_v23  ;;  %v1962_v53 = vpop.f32.mrb[37].mxu0 }
 0x98f   :  { %v1453_v45 = vpop.f32.mrb[38].mxu0  ;;  %v1585_v53 = vrot.slane %v2599_v40, %v224_v25  ;;  %v1591_v25 = vsub.s32 5, %v2250_v24 }
 0x990   :  { %v1459_v54 = vmul.f32 0.044715, %v1451_v52  ;;  %v1454_v55 = vadd.f32 %v1453_v45, %v1400_v23  ;;  %v1963_v47 = vpop.f32.mrb[39].mxu0  ;;  %v1457_v8 = vmul.f32 0.5, %v1451_v52 }
 0x992   :  { %v1461_v57 = vmul.f32 %v1459_v54, %v1451_v52  ;;  %v1460_v56 = vmul.f32 0.044715, %v1454_v55  ;;  %v1458_v10 = vmul.f32 0.5, %v1454_v55 }
 0x994   :  { %v1463_v59 = vmul.f32 %v1461_v57, %v1451_v52  ;;  %v1462_v60 = vmul.f32 %v1460_v56, %v1454_v55 }
 0x996   :  { %v1465_v62 = vadd.f32 %v1463_v59, %v1451_v52  ;;  %v1464_v63 = vmul.f32 %v1462_v60, %v1454_v55  ;;  %v1592_v60 = vrot.slane %v2573_v36, %v1591_v25 }
 0x998   :  { %v1467_v0 = vmul.f32 0.7978846, %v1465_v62  ;;  %v1466_v1 = vadd.f32 %v1464_v63, %v1454_v55 }
 0x99a   :  { %2126 = vtanh.f32 %v1467_v0  ;;  %v1468_v2 = vmul.f32 0.7978846, %v1466_v1 }
 0x99c   :  { %2128 = vtanh.f32 %v1468_v2 }
 0x9a4   :  { %v2127_v3 = vpop.eup %2126 }
 0x9a5   :  { %v1471_v7 = vadd.f32 1.0, %v2127_v3 }
 0x9a6   :  { %v2129_v6 = vpop.eup %2128 }
 0x9a7   :  { %v1472_v11 = vadd.f32 1.0, %v2129_v6  ;;  %v1473_v12 = vmul.f32 %v1471_v7, %v1457_v8 }
 0x9a9   :  { %v1474_v13 = vmul.f32 %v1472_v11, %v1458_v10 }
 0x9ab   :  { %v1475_v26 = vpack.c.bf16 %v1474_v13, %v1473_v12 }
 0x9ad   :  { %1973 = vmatmul.mubr.msk.bf16.vlgmr.msra.gmra.mrb[40].mxu1 %vm60_vm0, %v1475_v26 }
 0xa80   :  { %v1541_v20 = vpop.f32.mrb[40].mxu1 }
 0xa81   :  { %v1542_v21 = vadd.f32 %v1541_v20, %v1479_v19  ;;  %v1974_v27 = vpop.f32.mrb[41].mxu1 }
 0xa82   :  { %v1544_v33 = vpop.f32.mrb[42].mxu1 }
 0xa83   :  { %v1545_v28 = vadd.f32 %v1544_v33, %v1479_v19  ;;  %v1975_v29 = vpop.f32.mrb[43].mxu1  ;;  %v1548_v61 = vadd.f32 %v1542_v21, %v1394_v44 }
 0xa85   :  { %v1550_v15 = vsel %vm171_vm4, %v1548_v61, 0.0  ;;  %v1549_v30 = vadd.f32 %v1545_v28, %v1395_v46 }
 0xa86   :  { %1551 = vadd.xlane.f32.xlu1 %v1550_v15 }
 0xa87   :  { %v1553_v5 = vsel %vm171_vm4, %v1549_v30, 0.0 }
 0xa88   :  { %1554 = vadd.xlane.f32.xlu0 %v1553_v5 }
 0xb13   :  { %v1552_v32 = vpop.xlane.xlu1 %1551 }
 0xb14   :  { %v1556_v34 = vmul.f32 0.03125, %v1552_v32 }
 0xb15   :  { %v1555_v4 = vpop.xlane.xlu0 %1554 }
 0xb16   :  { %v1558_v18 = vsub.f32 %v1548_v61, %v1556_v34  ;;  %v1557_v38 = vmul.f32 0.03125, %v1555_v4 }
 0xb18   :  { %v1559_v39 = vsub.f32 %v1549_v30, %v1557_v38  ;;  %v1560_v41 = vmul.f32 %v1558_v18, %v1558_v18 }
 0xb1a   :  { %v1562_v42 = vsel %vm171_vm4, %v1560_v41, 0.0  ;;  %v1561_v14 = vmul.f32 %v1559_v39, %v1559_v39 }
 0xb1b   :  { %1563 = vadd.xlane.f32.xlu1 %v1562_v42 }
 0xb1c   :  { %v1565_v43 = vsel %vm171_vm4, %v1561_v14, 0.0 }
 0xb1d   :  { %1566 = vadd.xlane.f32.xlu0 %v1565_v43 }
 0xb2c   :  { %1593 = vrot.lane.b32.xlu1 %v2558_v31, %s2147_s19 }
 0xb30   :  { %1649 = vrot.lane.b32.xlu1 %v2558_v31, %s2142_s4  ;;  %v1579_v31 = vrot.slane %v2599_v40, %v2284_v35 }
 0xb33   :  { %1595 = vrot.lane.b32.xlu0 %v2564_v22, %s2147_s19 }
 0xb34   :  { %1651 = vrot.lane.b32.xlu1 %v2564_v22, %s2142_s4 }
 0xba8   :  { %v1564_v44 = vpop.xlane.xlu1 %1563 }
 0xba9   :  { %v1568_v46 = vmul.f32 0.03125, %v1564_v44 }
 0xbaa   :  { %v1567_v48 = vpop.xlane.xlu0 %1566 }
 0xbab   :  { %v1570_v49 = vadd.f32 1e-05, %v1568_v46  ;;  %v1569_v50 = vmul.f32 0.03125, %v1567_v48 }
 0xbac   :  { %v1594_v51 = vpop.permute.xlu1 %1593 }
 0xbad   :  { %2130 = vrsqrt.f32 %v1570_v49  ;;  %v1571_v37 = vadd.f32 1e-05, %v1569_v50  ;;  %1977 = vmatpush3.bf16.msra.mxu0 %v1594_v51 }
 0xbae   :  { %1978 = vmatprep.subr.bf16.mxu0 %v2140_v9  ;;  %v1596_v23 = vpop.permute.xlu0 %1595 }
 0xbaf   :  { %2132 = vrsqrt.f32 %v1571_v37 }
 0xbb0   :  { %v1650_v47 = vpop.permute.xlu1 %1649 }
 0xbb1   :  { %1979 = vmatpush3.bf16.msra.mxu0 %v1596_v23 }
 0xbb2   :  { %1984 = vmatprep.subr.bf16.mxu0 %v2140_v9 }
 0xbb4   :  { %v1652_v35 = vpop.permute.xlu1 %1651 }
 0xbb7   :  { %v2131_v22 = vpop.eup %2130 }
 0xbb8   :  { %v1574_v17 = vmul.f32 %v2131_v22, %v1558_v18 }
 0xbb9   :  { %v2133_v52 = vpop.eup %2132 }
 0xbba   :  { %v1580_v45 = vmul.f32 %v1579_v31, %v1574_v17  ;;  %v1575_v54 = vmul.f32 %v2133_v52, %v1559_v39 }
 0xbbc   :  { %v1581_v55 = vmul.f32 %v1579_v31, %v1575_v54  ;;  %v1586_v57 = vadd.f32 %v1585_v53, %v1580_v45 }
 0xbbe   :  { %v1587_v56 = vadd.f32 %v1585_v53, %v1581_v55 }
 0xbc0   :  { %v1588_v59 = vpack.c.bf16 %v1587_v56, %v1586_v57 }
 0xbc2   :  { %1981 = vmatmul.mubr.msk.bf16.vlgmr.msra.gmra.mrb[40].mxu0 %vm171_vm4, %v1588_v59 }
 0xbc3   :  { %1985 = vmatpush3.bf16.msra.mxu0 %v1650_v47  ;;  %1988 = vmatprep.mubr.msk.bf16.mxu0 %vm2141_vm3, %v2140_v9 }
 0xbc4   :  { %1986 = vmatprep.subr.bf16.mxu0 %v2140_v9  ;;  %v1648_v9 = vrot.slane %v2599_v40, %v1303_v58 }
 0xbc7   :  { %1987 = vmatpush3.bf16.msra.mxu0 %v1652_v35 }
 0xbca   :  { %1989 = vmatmul.mubr.msk.bf16.vlgmr.msra.gmra.mrb[44].mxu0 %vm171_vm4, %v1588_v59 }
 0xc95   :  { %v1636_v62 = vpop.f32.mrb[40].mxu0 }
 0xc96   :  { %v1637_v63 = vadd.f32 %v1636_v62, %v1592_v60  ;;  %v1982_v0 = vpop.f32.mrb[41].mxu0 }
 0xc97   :  { %v1639_v1 = vpop.f32.mrb[42].mxu0 }
 0xc98   :  { %2134 = vtanh.f32 %v1637_v63  ;;  %v1640_v2 = vadd.f32 %v1639_v1, %v1592_v60  ;;  %v1983_v3 = vpop.f32.mrb[43].mxu0 }
 0xc9a   :  { %2136 = vtanh.f32 %v1640_v2 }
 0xc9d   :  { %v1689_v7 = vpop.f32.mrb[44].mxu0 }
 0xc9e   :  { %v1990_v6 = vpop.f32.mrb[45].mxu0  ;;  %v1690_v12 = vadd.f32 %v1689_v7, %v1648_v9 }
 0xc9f   :  { %v1692_v8 = vpop.f32.mrb[46].mxu0 }
 0xca0   :  { %v1991_v10 = vpop.f32.mrb[47].mxu0  ;;  %v1693_v13 = vadd.f32 %v1692_v8, %v1648_v9 }
 0xca2   :  { %v2135_v11 = vpop.eup %2134 }
 0xca3   :  { %1698 = vrot.lane.b32.xlu0 %v2135_v11, %s2142_s4 }
 0xca4   :  { %v2137_v36 = vpop.eup %2136 }
 0xca5   :  { %1700 = vrot.lane.b32.xlu1 %v2137_v36, %s2142_s4 }
 0xca7   :  { %1706 = vrot.lane.b32.xlu0 %v1690_v12, %s2147_s19 }
 0xca9   :  { %1708 = vrot.lane.b32.xlu1 %v1693_v13, %s2147_s19 }
 0xd15   :  { %v1699_v26 = vpop.permute.xlu0 %1698 }
 0xd16   :  { %v1712_v19 = vsel %vm171_vm4, %v1586_v57, %v1699_v26 }
 0xd17   :  { %v1701_v16 = vpop.permute.xlu1 %1700 }
 0xd18   :  { %v1713_v40 = vsel %vm171_vm4, %v1587_v56, %v1701_v16 }
 0xd19   :  { %v1707_v24 = vpop.permute.xlu0 %1706 }
 0xd1a   :  { %v1714_v58 = vsel %vm60_vm0, %v1712_v19, %v1707_v24 }
 0xd1b   :  { %v1717_v20 = vsel %vm1716_vm9, %v1714_v58, 0.0  ;;  %v1709_v21 = vpop.permute.xlu1 %1708 }
 0xd1c   :  { %1719 = vst [vmem:[%s2659_s8] sm:$0xff] %v1717_v20  ;;  %v1715_v27 = vsel %vm60_vm0, %v1713_v40, %v1709_v21 }
 0xd1d   :  { %v1718_v33 = vsel %vm1716_vm9, %v1715_v27, 0.0 }
 0xd1e   :  { %1720 = vst [vmem:[%s2659_s8 + $0x8] sm:$0xff] %v1718_v33 }

</bundles_post_ra>
